<compile_context>
chip_gen: v7x
topology: tpu7x:2x2x1
jax: 0.10.0
libtpu: 0.0.40
codegen_flags: <defaults>
</compile_context>

<pallas_src>
import math

import jax
import jax.numpy as jnp
from jax import lax
from jax.experimental import pallas as pl
from jax.experimental.pallas import tpu as pltpu


# -----------------------------------------------------------------------------
# Fused Pallas kernel (one kernel for the whole network)
# -----------------------------------------------------------------------------
def make_fused_kernel(bt):
    """bt = batch-tile size handled by one grid step."""

    def kernel(p1_ref, w1_ref, b1_ref, s1_ref, t1_ref,
               w2_ref, b2_ref, s2_ref, t2_ref,
               w3_ref, b3_ref, w4_ref, b4_ref, o_ref):
        # -------- stage 1: conv1 + bias + ReLU + 2x2 max-pool + bn1 --------
        # One lane-dense bf16 matmul: LHS (36*bt, 16) = 4x4 stride-2 patches,
        # RHS (16, 128) block-structured, column = corner*32 + channel.
        y1 = jnp.dot(p1_ref[...], w1_ref[...], preferred_element_type=jnp.float32)
        y1 = jnp.maximum(y1 + b1_ref[...], 0.0)              # (36*bt, 128)
        # Pool = max over the 4 corner lane groups.
        pooled1 = jnp.maximum(jnp.maximum(y1[:, 0:32], y1[:, 32:64]),
                              jnp.maximum(y1[:, 64:96], y1[:, 96:128]))
        # BatchNorm1 (eval): y*s + t.  Rows ordered (u*6 + v)*bt + b over the 6x6 grid.
        pooled1 = pooled1 * s1_ref[...] + t1_ref[...]        # (36*bt, 32) f32

        # -------- stage 2: conv2 + bias + ReLU + 2x2 max-pool + bn2 --------
        # No lane concatenation: 9 matmul-accumulates per conv2 output row, each from
        # a sublane-contiguous pooled1 row slice and a (32, 64) weight row block.
        w2 = w2_ref[...].astype(jnp.float32)                 # hoisted cast, (288, 64)
        b2 = b2_ref[...]

        def conv2_row(r):
            acc = jnp.zeros((4 * bt, 64), jnp.float32)
            for di in range(3):
                for dj in range(3):
                    t = di * 3 + dj
                    lhs = pooled1[((r + di) * 6 + dj) * bt:
                                  ((r + di) * 6 + dj + 4) * bt, :]   # (4*bt, 32)
                    acc = acc + jnp.dot(lhs, w2[t * 32:(t + 1) * 32, :],
                                        preferred_element_type=jnp.float32)
            return jnp.maximum(acc + b2, 0.0)                # (4*bt, 64), row = c*bt + b

        y2 = [conv2_row(r) for r in range(4)]
        row_max = (jnp.maximum(y2[0], y2[1]),                # pool over r for ph = 0
                   jnp.maximum(y2[2], y2[3]))                # pool over r for ph = 1
        s2 = s2_ref[...]
        t2 = t2_ref[...]
        pooled2 = []                                         # order: pos = ph*2 + pw
        for m in row_max:
            for pw in range(2):
                blk = jnp.maximum(m[2 * pw * bt:(2 * pw + 1) * bt, :],
                                  m[(2 * pw + 1) * bt:(2 * pw + 2) * bt, :])
                pooled2.append(blk * s2 + t2)                # (bt, 64)

        # -------- stage 3: fc1 + ReLU + fc2 + softmax --------
        # fc1 as 4 matmul-accumulates (no (bt,256) lane concat); w3 rows were permuted
        # host-side to match torch's NCHW .view(-1, 256) ordering (c*4 + pos).
        w3 = w3_ref[...].astype(jnp.float32)                 # (256, 128)
        h = jnp.zeros((bt, 128), jnp.float32)
        for pos in range(4):
            h = h + jnp.dot(pooled2[pos], w3[pos * 64:(pos + 1) * 64, :],
                            preferred_element_type=jnp.float32)
        h = jnp.maximum(h + b3_ref[...], 0.0)                # (bt, 128)

        logits = jnp.dot(h, w4_ref[...].astype(jnp.float32),
                         preferred_element_type=jnp.float32) + b4_ref[...]
        mx = jnp.max(logits, axis=-1, keepdims=True)
        e = jnp.exp(logits - mx)
        denom = jnp.sum(e, axis=-1, keepdims=True)
        # approx=False keeps rows summing to 1 exactly; approx=True moves the divide
        # to the (idle) EUP slot if tolerance is relaxed.
        o_ref[...] = (e * pl.reciprocal(denom, approx=False)).astype(o_ref.dtype)

    return kernel


# -----------------------------------------------------------------------------
# Deterministic parameter construction (Xavier uniform, like the PyTorch module)
# -----------------------------------------------------------------------------
def _xavier_uniform(key, shape, fan_in, fan_out):
    bound = math.sqrt(6.0 / (fan_in + fan_out))
    return jax.random.uniform(key, shape, jnp.float32, -bound, bound)


def _bias_uniform(key, shape, fan_in):
    bound = 1.0 / math.sqrt(fan_in)
    return jax.random.uniform(key, shape, jnp.float32, -bound, bound)


def make_params(key):
    ks = jax.random.split(key, 8)
    p = {}
    # conv1: (32, 1, 3, 3)
    p["w1"] = _xavier_uniform(ks[0], (32, 1, 3, 3), fan_in=9, fan_out=32 * 9)
    p["b1"] = _bias_uniform(ks[1], (32,), fan_in=9)
    # conv2: (64, 32, 3, 3)
    p["w2"] = _xavier_uniform(ks[2], (64, 32, 3, 3), fan_in=32 * 9, fan_out=64 * 9)
    p["b2"] = _bias_uniform(ks[3], (64,), fan_in=32 * 9)
    # fc1: (128, 256), fc2: (10, 128)   (PyTorch Linear: y = x @ W.T + b)
    p["w3"] = _xavier_uniform(ks[4], (128, 256), fan_in=256, fan_out=128)
    p["b3"] = _bias_uniform(ks[5], (128,), fan_in=256)
    p["w4"] = _xavier_uniform(ks[6], (10, 128), fan_in=128, fan_out=10)
    p["b4"] = _bias_uniform(ks[7], (10,), fan_in=128)
    # BatchNorm (eval mode): gamma=1, beta=0, running_mean=0, running_var=1
    eps = 1e-5
    for name, c in (("bn1", 32), ("bn2", 64)):
        gamma = jnp.ones((c,), jnp.float32)
        beta = jnp.zeros((c,), jnp.float32)
        rmean = jnp.zeros((c,), jnp.float32)
        rvar = jnp.ones((c,), jnp.float32)
        s = gamma / jnp.sqrt(rvar + eps)
        t = beta - rmean * s
        p[name + "_s"] = s
        p[name + "_t"] = t
    return p


def prepare_kernel_params(p):
    """One-time (hoisted) preprocessing of weights into matmul-ready layouts."""
    kp = {}
    # conv1 -> block-structured (16, 128): column = corner*32 + co, row = pi*4 + pj of
    # the 4x4 stride-2 input patch.  Zero blocks are exact f32 zeros (bf16-safe).
    w1flat = p["w1"].reshape(32, 9)                          # (co, di*3 + dj)
    blocks = []
    for oi in range(2):
        for oj in range(2):
            blk = jnp.zeros((16, 32), jnp.float32)
            for di in range(3):
                for dj in range(3):
                    blk = blk.at[(oi + di) * 4 + (oj + dj), :].set(w1flat[:, di * 3 + dj])
            blocks.append(blk)
    kp["w1m"] = jnp.concatenate(blocks, axis=1).astype(jnp.bfloat16)   # (16, 128)
    kp["b1m"] = jnp.tile(p["b1"], 4).reshape(1, 128)                   # bias per corner
    kp["s1"] = p["bn1_s"].reshape(1, 32)
    kp["t1"] = p["bn1_t"].reshape(1, 32)
    # conv2 weight, rows "tap-major, channel-minor": row = (di*3 + dj)*32 + ci
    kp["w2m"] = jnp.transpose(p["w2"], (2, 3, 1, 0)).reshape(288, 64).astype(jnp.bfloat16)
    kp["b2m"] = p["b2"].reshape(1, 64)
    kp["s2"] = p["bn2_s"].reshape(1, 64)
    kp["t2"] = p["bn2_t"].reshape(1, 64)
    # fc1: kernel flatten order = pos*64 + c; torch .view(-1, 256) order = c*4 + pos
    perm = (4 * jnp.arange(64)[None, :] + jnp.arange(4)[:, None]).reshape(-1)
    kp["w3m"] = p["w3"].T[perm, :].astype(jnp.bfloat16)                # (256, 128)
    kp["b3m"] = p["b3"].reshape(1, 128)
    kp["w4m"] = p["w4"].T.astype(jnp.bfloat16)                         # (128, 10)
    kp["b4m"] = p["b4"].reshape(1, 10)
    return kp


# -----------------------------------------------------------------------------
# Batch-tile selection (review: bt ~16-32; give v7x's 2 TensorCores >= 2 grid steps)
# -----------------------------------------------------------------------------
def pick_bt(B):
    # Tiles other than the full batch must be multiples of 8 (sublane-aligned blocks).
    for bt in (32, 16, 8):
        if B % bt == 0 and B // bt >= 2:
            return bt
    return B  # single tile: block shape == full array, no (8,128) alignment constraint


# -----------------------------------------------------------------------------
# Forward pass: light host-side 4x4-patch extraction, then a single fused pallas_call
# -----------------------------------------------------------------------------
@jax.jit
def forward(x, kp):
    B = x.shape[0]
    bt = pick_bt(B)
    nbt = B // bt
    rows = 36 * bt                       # conv1 LHS rows per batch tile

    # 4x4 stride-2 patch "im2col" (K=16): patch (u, v) covers x[:, 0, 2u:2u+4, 2v:2v+4];
    # row = tile*rows + (u*6 + v)*bt + b_local, col = pi*4 + pj.  Stored bf16 to halve
    # the dominant HBM DMA.
    x2 = x[:, 0]                                                        # (B, 14, 14)
    taps = [x2[:, pi:pi + 11:2, pj:pj + 11:2] for pi in range(4) for pj in range(4)]
    p1 = jnp.stack(taps, axis=-1)                                       # (B, 6, 6, 16)
    p1 = p1.reshape(nbt, bt, 36, 16).transpose(0, 2, 1, 3).reshape(nbt * rows, 16)
    p1 = p1.astype(jnp.bfloat16)

    in_specs = [
        pl.BlockSpec((rows, 16), lambda i: (i, 0)),     # conv1 patches (per batch tile)
        pl.BlockSpec((16, 128), lambda i: (0, 0)),      # w1 (block-structured, bf16)
        pl.BlockSpec((1, 128), lambda i: (0, 0)),       # b1 (tiled per corner)
        pl.BlockSpec((1, 32), lambda i: (0, 0)),        # bn1 scale
        pl.BlockSpec((1, 32), lambda i: (0, 0)),        # bn1 shift
        pl.BlockSpec((288, 64), lambda i: (0, 0)),      # w2 (bf16)
        pl.BlockSpec((1, 64), lambda i: (0, 0)),        # b2
        pl.BlockSpec((1, 64), lambda i: (0, 0)),        # bn2 scale
        pl.BlockSpec((1, 64), lambda i: (0, 0)),        # bn2 shift
        pl.BlockSpec((256, 128), lambda i: (0, 0)),     # w3 (row-permuted, bf16)
        pl.BlockSpec((1, 128), lambda i: (0, 0)),       # b3
        pl.BlockSpec((128, 10), lambda i: (0, 0)),      # w4 (bf16)
        pl.BlockSpec((1, 10), lambda i: (0, 0)),        # b4
    ]
    return pl.pallas_call(
        make_fused_kernel(bt),
        grid=(nbt,),
        in_specs=in_specs,
        out_specs=pl.BlockSpec((bt, 10), lambda i: (i, 0)),
        out_shape=jax.ShapeDtypeStruct((B, 10), jnp.float32),
        compiler_params=pltpu.CompilerParams(dimension_semantics=("parallel",)),
    )(p1, kp["w1m"], kp["b1m"], kp["s1"], kp["t1"],
      kp["w2m"], kp["b2m"], kp["s2"], kp["t2"],
      kp["w3m"], kp["b3m"], kp["w4m"], kp["b4m"])


# -----------------------------------------------------------------------------
# Pure-JAX reference (uses the same bf16-rounded weights/input the kernel consumes,
# with f32 accumulation at HIGHEST precision, to isolate the Pallas path)
# -----------------------------------------------------------------------------
def reference(x, p):
    rb = lambda a: a.astype(jnp.bfloat16).astype(jnp.float32)
    hp = lax.Precision.HIGHEST
    x = rb(x)
    w1, w2, w3, w4 = rb(p["w1"]), rb(p["w2"]), rb(p["w3"]), rb(p["w4"])
    B = x.shape[0]
    dn = ("NCHW", "OIHW", "NCHW")
    y = lax.conv_general_dilated(x, w1, (1, 1), "VALID", dimension_numbers=dn,
                                 precision=hp)
    y = jnp.maximum(y + p["b1"][None, :, None, None], 0.0)
    y = y.reshape(B, 32, 6, 2, 6, 2).max(axis=(3, 5))
    y = y * p["bn1_s"][None, :, None, None] + p["bn1_t"][None, :, None, None]
    z = lax.conv_general_dilated(y, w2, (1, 1), "VALID", dimension_numbers=dn,
                                 precision=hp)
    z = jnp.maximum(z + p["b2"][None, :, None, None], 0.0)
    z = z.reshape(B, 64, 2, 2, 2, 2).max(axis=(3, 5))
    z = z * p["bn2_s"][None, :, None, None] + p["bn2_t"][None, :, None, None]
    flat = z.reshape(B, 256)                             # torch .view(-1, 256) order
    h = jnp.maximum(jnp.dot(flat, w3.T, precision=hp) + p["b3"], 0.0)
    logits = jnp.dot(h, w4.T, precision=hp) + p["b4"]
    return jax.nn.softmax(logits, axis=1)


if __name__ == "__main__":
    key = jax.random.PRNGKey(0)
    k_param, k_x = jax.random.split(key)
    params = make_params(k_param)
    kparams = prepare_kernel_params(params)          # hoisted weight prep (done once)
    x = jax.random.normal(k_x, (2, 1, 14, 14), jnp.float32)   # NCHW like PyTorch

    out = jax.block_until_ready(forward(x, kparams))
    ref = jax.block_until_ready(reference(x, params))

    assert out.shape == (2, 10), out.shape
    assert jnp.allclose(jnp.sum(out, axis=1), 1.0, atol=1e-5)
    assert jnp.allclose(out, ref, rtol=2e-3, atol=2e-4), (out, ref)
    print("KERNEL_OK")
</pallas_src>

<mosaic_0001>
module attributes {stable_mosaic.version = 11 : i64} {
  func.func @kernel(%arg0: i32, %arg1: memref<72x16xbf16, #tpu.memory_space<vmem>>, %arg2: memref<16x128xbf16, #tpu.memory_space<vmem>>, %arg3: memref<1x128xf32, #tpu.memory_space<vmem>>, %arg4: memref<1x32xf32, #tpu.memory_space<vmem>>, %arg5: memref<1x32xf32, #tpu.memory_space<vmem>>, %arg6: memref<288x64xbf16, #tpu.memory_space<vmem>>, %arg7: memref<1x64xf32, #tpu.memory_space<vmem>>, %arg8: memref<1x64xf32, #tpu.memory_space<vmem>>, %arg9: memref<1x64xf32, #tpu.memory_space<vmem>>, %arg10: memref<256x128xbf16, #tpu.memory_space<vmem>>, %arg11: memref<1x128xf32, #tpu.memory_space<vmem>>, %arg12: memref<128x10xbf16, #tpu.memory_space<vmem>>, %arg13: memref<1x10xf32, #tpu.memory_space<vmem>>, %arg14: memref<2x10xf32, #tpu.memory_space<vmem>>) attributes {dimension_semantics = [#tpu.dimension_semantics<parallel>], iteration_bounds = array<i64: 1>, scalar_prefetch = 0 : i64, scratch_operands = 0 : i64, tpu.core_type = #tpu.core_type<tc>, window_params = [{transform_indices = @transform_0, window_bounds = array<i64: 72, 16>}, {pipeline_mode = #tpu.pipeline_mode<synchronous>, transform_indices = @transform_1, window_bounds = array<i64: 16, 128>}, {pipeline_mode = #tpu.pipeline_mode<synchronous>, transform_indices = @transform_2, window_bounds = array<i64: 1, 128>}, {pipeline_mode = #tpu.pipeline_mode<synchronous>, transform_indices = @transform_3, window_bounds = array<i64: 1, 32>}, {pipeline_mode = #tpu.pipeline_mode<synchronous>, transform_indices = @transform_4, window_bounds = array<i64: 1, 32>}, {pipeline_mode = #tpu.pipeline_mode<synchronous>, transform_indices = @transform_5, window_bounds = array<i64: 288, 64>}, {pipeline_mode = #tpu.pipeline_mode<synchronous>, transform_indices = @transform_6, window_bounds = array<i64: 1, 64>}, {pipeline_mode = #tpu.pipeline_mode<synchronous>, transform_indices = @transform_7, window_bounds = array<i64: 1, 64>}, {pipeline_mode = #tpu.pipeline_mode<synchronous>, transform_indices = @transform_8, window_bounds = array<i64: 1, 64>}, {pipeline_mode = #tpu.pipeline_mode<synchronous>, transform_indices = @transform_9, window_bounds = array<i64: 256, 128>}, {pipeline_mode = #tpu.pipeline_mode<synchronous>, transform_indices = @transform_10, window_bounds = array<i64: 1, 128>}, {pipeline_mode = #tpu.pipeline_mode<synchronous>, transform_indices = @transform_11, window_bounds = array<i64: 128, 10>}, {pipeline_mode = #tpu.pipeline_mode<synchronous>, transform_indices = @transform_12, window_bounds = array<i64: 1, 10>}, {transform_indices = @transform_13, window_bounds = array<i64: 2, 10>}]} {
    %c0 = arith.constant 0 : index
    %c0_0 = arith.constant 0 : index
    %0 = vector.load %arg1[%c0, %c0_0] : memref<72x16xbf16, #tpu.memory_space<vmem>>, vector<72x16xbf16>
    %c0_1 = arith.constant 0 : index
    %c0_2 = arith.constant 0 : index
    %1 = vector.load %arg2[%c0_1, %c0_2] : memref<16x128xbf16, #tpu.memory_space<vmem>>, vector<16x128xbf16>
    %cst = arith.constant dense<0.000000e+00> : vector<72x128xf32>
    %2 = tpu.matmul %0, %1, %cst {dimension_numbers = #tpu.dot_dimension_numbers<[1], [0], [0], [1], [0, 0, 1, 1], [], []>} : vector<72x16xbf16>, vector<16x128xbf16>, vector<72x128xf32> -> vector<72x128xf32>
    %c0_3 = arith.constant 0 : index
    %c0_4 = arith.constant 0 : index
    %3 = vector.load %arg3[%c0_3, %c0_4] : memref<1x128xf32, #tpu.memory_space<vmem>>, vector<1x128xf32>
    %4 = vector.broadcast %3 : vector<1x128xf32> to vector<72x128xf32>
    %5 = arith.addf %2, %4 : vector<72x128xf32>
    %cst_5 = arith.constant 0.000000e+00 : f32
    %6 = vector.broadcast %cst_5 : f32 to vector<72x128xf32>
    %7 = arith.maximumf %5, %6 : vector<72x128xf32>
    %8 = vector.extract_strided_slice %7 {offsets = [0, 0], sizes = [72, 32], strides = [1, 1]} : vector<72x128xf32> to vector<72x32xf32>
    %9 = vector.extract_strided_slice %7 {offsets = [0, 32], sizes = [72, 32], strides = [1, 1]} : vector<72x128xf32> to vector<72x32xf32>
    %10 = arith.maximumf %8, %9 : vector<72x32xf32>
    %11 = vector.extract_strided_slice %7 {offsets = [0, 64], sizes = [72, 32], strides = [1, 1]} : vector<72x128xf32> to vector<72x32xf32>
    %12 = vector.extract_strided_slice %7 {offsets = [0, 96], sizes = [72, 32], strides = [1, 1]} : vector<72x128xf32> to vector<72x32xf32>
    %13 = arith.maximumf %11, %12 : vector<72x32xf32>
    %14 = arith.maximumf %10, %13 : vector<72x32xf32>
    %c0_6 = arith.constant 0 : index
    %c0_7 = arith.constant 0 : index
    %15 = vector.load %arg4[%c0_6, %c0_7] : memref<1x32xf32, #tpu.memory_space<vmem>>, vector<1x32xf32>
    %16 = vector.broadcast %15 : vector<1x32xf32> to vector<72x32xf32>
    %17 = arith.mulf %14, %16 : vector<72x32xf32>
    %c0_8 = arith.constant 0 : index
    %c0_9 = arith.constant 0 : index
    %18 = vector.load %arg5[%c0_8, %c0_9] : memref<1x32xf32, #tpu.memory_space<vmem>>, vector<1x32xf32>
    %19 = vector.broadcast %18 : vector<1x32xf32> to vector<72x32xf32>
    %20 = arith.addf %17, %19 : vector<72x32xf32>
    %c0_10 = arith.constant 0 : index
    %c0_11 = arith.constant 0 : index
    %21 = vector.load %arg6[%c0_10, %c0_11] : memref<288x64xbf16, #tpu.memory_space<vmem>>, vector<288x64xbf16>
    %22 = arith.extf %21 : vector<288x64xbf16> to vector<288x64xf32>
    %c0_12 = arith.constant 0 : index
    %c0_13 = arith.constant 0 : index
    %23 = vector.load %arg7[%c0_12, %c0_13] : memref<1x64xf32, #tpu.memory_space<vmem>>, vector<1x64xf32>
    %cst_14 = arith.constant 0.000000e+00 : f32
    %24 = vector.broadcast %cst_14 : f32 to vector<8x64xf32>
    %25 = vector.extract_strided_slice %20 {offsets = [0, 0], sizes = [8, 32], strides = [1, 1]} : vector<72x32xf32> to vector<8x32xf32>
    %26 = vector.extract_strided_slice %22 {offsets = [0, 0], sizes = [32, 64], strides = [1, 1]} : vector<288x64xf32> to vector<32x64xf32>
    %cst_15 = arith.constant dense<0.000000e+00> : vector<8x64xf32>
    %27 = tpu.matmul %25, %26, %cst_15 {dimension_numbers = #tpu.dot_dimension_numbers<[1], [0], [0], [1], [0, 0, 1, 1], [], []>} : vector<8x32xf32>, vector<32x64xf32>, vector<8x64xf32> -> vector<8x64xf32>
    %28 = arith.addf %24, %27 : vector<8x64xf32>
    %29 = vector.extract_strided_slice %20 {offsets = [2, 0], sizes = [8, 32], strides = [1, 1]} : vector<72x32xf32> to vector<8x32xf32>
    %30 = vector.extract_strided_slice %22 {offsets = [32, 0], sizes = [32, 64], strides = [1, 1]} : vector<288x64xf32> to vector<32x64xf32>
    %cst_16 = arith.constant dense<0.000000e+00> : vector<8x64xf32>
    %31 = tpu.matmul %29, %30, %cst_16 {dimension_numbers = #tpu.dot_dimension_numbers<[1], [0], [0], [1], [0, 0, 1, 1], [], []>} : vector<8x32xf32>, vector<32x64xf32>, vector<8x64xf32> -> vector<8x64xf32>
    %32 = arith.addf %28, %31 : vector<8x64xf32>
    %33 = vector.extract_strided_slice %20 {offsets = [4, 0], sizes = [8, 32], strides = [1, 1]} : vector<72x32xf32> to vector<8x32xf32>
    %34 = vector.extract_strided_slice %22 {offsets = [64, 0], sizes = [32, 64], strides = [1, 1]} : vector<288x64xf32> to vector<32x64xf32>
    %cst_17 = arith.constant dense<0.000000e+00> : vector<8x64xf32>
    %35 = tpu.matmul %33, %34, %cst_17 {dimension_numbers = #tpu.dot_dimension_numbers<[1], [0], [0], [1], [0, 0, 1, 1], [], []>} : vector<8x32xf32>, vector<32x64xf32>, vector<8x64xf32> -> vector<8x64xf32>
    %36 = arith.addf %32, %35 : vector<8x64xf32>
    %37 = vector.extract_strided_slice %20 {offsets = [12, 0], sizes = [8, 32], strides = [1, 1]} : vector<72x32xf32> to vector<8x32xf32>
    %38 = vector.extract_strided_slice %22 {offsets = [96, 0], sizes = [32, 64], strides = [1, 1]} : vector<288x64xf32> to vector<32x64xf32>
    %cst_18 = arith.constant dense<0.000000e+00> : vector<8x64xf32>
    %39 = tpu.matmul %37, %38, %cst_18 {dimension_numbers = #tpu.dot_dimension_numbers<[1], [0], [0], [1], [0, 0, 1, 1], [], []>} : vector<8x32xf32>, vector<32x64xf32>, vector<8x64xf32> -> vector<8x64xf32>
    %40 = arith.addf %36, %39 : vector<8x64xf32>
    %41 = vector.extract_strided_slice %20 {offsets = [14, 0], sizes = [8, 32], strides = [1, 1]} : vector<72x32xf32> to vector<8x32xf32>
    %42 = vector.extract_strided_slice %22 {offsets = [128, 0], sizes = [32, 64], strides = [1, 1]} : vector<288x64xf32> to vector<32x64xf32>
    %cst_19 = arith.constant dense<0.000000e+00> : vector<8x64xf32>
    %43 = tpu.matmul %41, %42, %cst_19 {dimension_numbers = #tpu.dot_dimension_numbers<[1], [0], [0], [1], [0, 0, 1, 1], [], []>} : vector<8x32xf32>, vector<32x64xf32>, vector<8x64xf32> -> vector<8x64xf32>
    %44 = arith.addf %40, %43 : vector<8x64xf32>
    %45 = vector.extract_strided_slice %20 {offsets = [16, 0], sizes = [8, 32], strides = [1, 1]} : vector<72x32xf32> to vector<8x32xf32>
    %46 = vector.extract_strided_slice %22 {offsets = [160, 0], sizes = [32, 64], strides = [1, 1]} : vector<288x64xf32> to vector<32x64xf32>
    %cst_20 = arith.constant dense<0.000000e+00> : vector<8x64xf32>
    %47 = tpu.matmul %45, %46, %cst_20 {dimension_numbers = #tpu.dot_dimension_numbers<[1], [0], [0], [1], [0, 0, 1, 1], [], []>} : vector<8x32xf32>, vector<32x64xf32>, vector<8x64xf32> -> vector<8x64xf32>
    %48 = arith.addf %44, %47 : vector<8x64xf32>
    %49 = vector.extract_strided_slice %20 {offsets = [24, 0], sizes = [8, 32], strides = [1, 1]} : vector<72x32xf32> to vector<8x32xf32>
    %50 = vector.extract_strided_slice %22 {offsets = [192, 0], sizes = [32, 64], strides = [1, 1]} : vector<288x64xf32> to vector<32x64xf32>
    %cst_21 = arith.constant dense<0.000000e+00> : vector<8x64xf32>
    %51 = tpu.matmul %49, %50, %cst_21 {dimension_numbers = #tpu.dot_dimension_numbers<[1], [0], [0], [1], [0, 0, 1, 1], [], []>} : vector<8x32xf32>, vector<32x64xf32>, vector<8x64xf32> -> vector<8x64xf32>
    %52 = arith.addf %48, %51 : vector<8x64xf32>
    %53 = vector.extract_strided_slice %20 {offsets = [26, 0], sizes = [8, 32], strides = [1, 1]} : vector<72x32xf32> to vector<8x32xf32>
    %54 = vector.extract_strided_slice %22 {offsets = [224, 0], sizes = [32, 64], strides = [1, 1]} : vector<288x64xf32> to vector<32x64xf32>
    %cst_22 = arith.constant dense<0.000000e+00> : vector<8x64xf32>
    %55 = tpu.matmul %53, %54, %cst_22 {dimension_numbers = #tpu.dot_dimension_numbers<[1], [0], [0], [1], [0, 0, 1, 1], [], []>} : vector<8x32xf32>, vector<32x64xf32>, vector<8x64xf32> -> vector<8x64xf32>
    %56 = arith.addf %52, %55 : vector<8x64xf32>
    %57 = vector.extract_strided_slice %20 {offsets = [28, 0], sizes = [8, 32], strides = [1, 1]} : vector<72x32xf32> to vector<8x32xf32>
    %58 = vector.extract_strided_slice %22 {offsets = [256, 0], sizes = [32, 64], strides = [1, 1]} : vector<288x64xf32> to vector<32x64xf32>
    %cst_23 = arith.constant dense<0.000000e+00> : vector<8x64xf32>
    %59 = tpu.matmul %57, %58, %cst_23 {dimension_numbers = #tpu.dot_dimension_numbers<[1], [0], [0], [1], [0, 0, 1, 1], [], []>} : vector<8x32xf32>, vector<32x64xf32>, vector<8x64xf32> -> vector<8x64xf32>
    %60 = arith.addf %56, %59 : vector<8x64xf32>
    %61 = vector.broadcast %23 : vector<1x64xf32> to vector<8x64xf32>
    %62 = arith.addf %60, %61 : vector<8x64xf32>
    %cst_24 = arith.constant 0.000000e+00 : f32
    %63 = vector.broadcast %cst_24 : f32 to vector<8x64xf32>
    %64 = arith.maximumf %62, %63 : vector<8x64xf32>
    %cst_25 = arith.constant 0.000000e+00 : f32
    %65 = vector.broadcast %cst_25 : f32 to vector<8x64xf32>
    %66 = vector.extract_strided_slice %20 {offsets = [12, 0], sizes = [8, 32], strides = [1, 1]} : vector<72x32xf32> to vector<8x32xf32>
    %67 = vector.extract_strided_slice %22 {offsets = [0, 0], sizes = [32, 64], strides = [1, 1]} : vector<288x64xf32> to vector<32x64xf32>
    %cst_26 = arith.constant dense<0.000000e+00> : vector<8x64xf32>
    %68 = tpu.matmul %66, %67, %cst_26 {dimension_numbers = #tpu.dot_dimension_numbers<[1], [0], [0], [1], [0, 0, 1, 1], [], []>} : vector<8x32xf32>, vector<32x64xf32>, vector<8x64xf32> -> vector<8x64xf32>
    %69 = arith.addf %65, %68 : vector<8x64xf32>
    %70 = vector.extract_strided_slice %20 {offsets = [14, 0], sizes = [8, 32], strides = [1, 1]} : vector<72x32xf32> to vector<8x32xf32>
    %71 = vector.extract_strided_slice %22 {offsets = [32, 0], sizes = [32, 64], strides = [1, 1]} : vector<288x64xf32> to vector<32x64xf32>
    %cst_27 = arith.constant dense<0.000000e+00> : vector<8x64xf32>
    %72 = tpu.matmul %70, %71, %cst_27 {dimension_numbers = #tpu.dot_dimension_numbers<[1], [0], [0], [1], [0, 0, 1, 1], [], []>} : vector<8x32xf32>, vector<32x64xf32>, vector<8x64xf32> -> vector<8x64xf32>
    %73 = arith.addf %69, %72 : vector<8x64xf32>
    %74 = vector.extract_strided_slice %20 {offsets = [16, 0], sizes = [8, 32], strides = [1, 1]} : vector<72x32xf32> to vector<8x32xf32>
    %75 = vector.extract_strided_slice %22 {offsets = [64, 0], sizes = [32, 64], strides = [1, 1]} : vector<288x64xf32> to vector<32x64xf32>
    %cst_28 = arith.constant dense<0.000000e+00> : vector<8x64xf32>
    %76 = tpu.matmul %74, %75, %cst_28 {dimension_numbers = #tpu.dot_dimension_numbers<[1], [0], [0], [1], [0, 0, 1, 1], [], []>} : vector<8x32xf32>, vector<32x64xf32>, vector<8x64xf32> -> vector<8x64xf32>
    %77 = arith.addf %73, %76 : vector<8x64xf32>
    %78 = vector.extract_strided_slice %20 {offsets = [24, 0], sizes = [8, 32], strides = [1, 1]} : vector<72x32xf32> to vector<8x32xf32>
    %79 = vector.extract_strided_slice %22 {offsets = [96, 0], sizes = [32, 64], strides = [1, 1]} : vector<288x64xf32> to vector<32x64xf32>
    %cst_29 = arith.constant dense<0.000000e+00> : vector<8x64xf32>
    %80 = tpu.matmul %78, %79, %cst_29 {dimension_numbers = #tpu.dot_dimension_numbers<[1], [0], [0], [1], [0, 0, 1, 1], [], []>} : vector<8x32xf32>, vector<32x64xf32>, vector<8x64xf32> -> vector<8x64xf32>
    %81 = arith.addf %77, %80 : vector<8x64xf32>
    %82 = vector.extract_strided_slice %20 {offsets = [26, 0], sizes = [8, 32], strides = [1, 1]} : vector<72x32xf32> to vector<8x32xf32>
    %83 = vector.extract_strided_slice %22 {offsets = [128, 0], sizes = [32, 64], strides = [1, 1]} : vector<288x64xf32> to vector<32x64xf32>
    %cst_30 = arith.constant dense<0.000000e+00> : vector<8x64xf32>
    %84 = tpu.matmul %82, %83, %cst_30 {dimension_numbers = #tpu.dot_dimension_numbers<[1], [0], [0], [1], [0, 0, 1, 1], [], []>} : vector<8x32xf32>, vector<32x64xf32>, vector<8x64xf32> -> vector<8x64xf32>
    %85 = arith.addf %81, %84 : vector<8x64xf32>
    %86 = vector.extract_strided_slice %20 {offsets = [28, 0], sizes = [8, 32], strides = [1, 1]} : vector<72x32xf32> to vector<8x32xf32>
    %87 = vector.extract_strided_slice %22 {offsets = [160, 0], sizes = [32, 64], strides = [1, 1]} : vector<288x64xf32> to vector<32x64xf32>
    %cst_31 = arith.constant dense<0.000000e+00> : vector<8x64xf32>
    %88 = tpu.matmul %86, %87, %cst_31 {dimension_numbers = #tpu.dot_dimension_numbers<[1], [0], [0], [1], [0, 0, 1, 1], [], []>} : vector<8x32xf32>, vector<32x64xf32>, vector<8x64xf32> -> vector<8x64xf32>
    %89 = arith.addf %85, %88 : vector<8x64xf32>
    %90 = vector.extract_strided_slice %20 {offsets = [36, 0], sizes = [8, 32], strides = [1, 1]} : vector<72x32xf32> to vector<8x32xf32>
    %91 = vector.extract_strided_slice %22 {offsets = [192, 0], sizes = [32, 64], strides = [1, 1]} : vector<288x64xf32> to vector<32x64xf32>
    %cst_32 = arith.constant dense<0.000000e+00> : vector<8x64xf32>
    %92 = tpu.matmul %90, %91, %cst_32 {dimension_numbers = #tpu.dot_dimension_numbers<[1], [0], [0], [1], [0, 0, 1, 1], [], []>} : vector<8x32xf32>, vector<32x64xf32>, vector<8x64xf32> -> vector<8x64xf32>
    %93 = arith.addf %89, %92 : vector<8x64xf32>
    %94 = vector.extract_strided_slice %20 {offsets = [38, 0], sizes = [8, 32], strides = [1, 1]} : vector<72x32xf32> to vector<8x32xf32>
    %95 = vector.extract_strided_slice %22 {offsets = [224, 0], sizes = [32, 64], strides = [1, 1]} : vector<288x64xf32> to vector<32x64xf32>
    %cst_33 = arith.constant dense<0.000000e+00> : vector<8x64xf32>
    %96 = tpu.matmul %94, %95, %cst_33 {dimension_numbers = #tpu.dot_dimension_numbers<[1], [0], [0], [1], [0, 0, 1, 1], [], []>} : vector<8x32xf32>, vector<32x64xf32>, vector<8x64xf32> -> vector<8x64xf32>
    %97 = arith.addf %93, %96 : vector<8x64xf32>
    %98 = vector.extract_strided_slice %20 {offsets = [40, 0], sizes = [8, 32], strides = [1, 1]} : vector<72x32xf32> to vector<8x32xf32>
    %99 = vector.extract_strided_slice %22 {offsets = [256, 0], sizes = [32, 64], strides = [1, 1]} : vector<288x64xf32> to vector<32x64xf32>
    %cst_34 = arith.constant dense<0.000000e+00> : vector<8x64xf32>
    %100 = tpu.matmul %98, %99, %cst_34 {dimension_numbers = #tpu.dot_dimension_numbers<[1], [0], [0], [1], [0, 0, 1, 1], [], []>} : vector<8x32xf32>, vector<32x64xf32>, vector<8x64xf32> -> vector<8x64xf32>
    %101 = arith.addf %97, %100 : vector<8x64xf32>
    %102 = vector.broadcast %23 : vector<1x64xf32> to vector<8x64xf32>
    %103 = arith.addf %101, %102 : vector<8x64xf32>
    %cst_35 = arith.constant 0.000000e+00 : f32
    %104 = vector.broadcast %cst_35 : f32 to vector<8x64xf32>
    %105 = arith.maximumf %103, %104 : vector<8x64xf32>
    %cst_36 = arith.constant 0.000000e+00 : f32
    %106 = vector.broadcast %cst_36 : f32 to vector<8x64xf32>
    %107 = vector.extract_strided_slice %20 {offsets = [24, 0], sizes = [8, 32], strides = [1, 1]} : vector<72x32xf32> to vector<8x32xf32>
    %108 = vector.extract_strided_slice %22 {offsets = [0, 0], sizes = [32, 64], strides = [1, 1]} : vector<288x64xf32> to vector<32x64xf32>
    %cst_37 = arith.constant dense<0.000000e+00> : vector<8x64xf32>
    %109 = tpu.matmul %107, %108, %cst_37 {dimension_numbers = #tpu.dot_dimension_numbers<[1], [0], [0], [1], [0, 0, 1, 1], [], []>} : vector<8x32xf32>, vector<32x64xf32>, vector<8x64xf32> -> vector<8x64xf32>
    %110 = arith.addf %106, %109 : vector<8x64xf32>
    %111 = vector.extract_strided_slice %20 {offsets = [26, 0], sizes = [8, 32], strides = [1, 1]} : vector<72x32xf32> to vector<8x32xf32>
    %112 = vector.extract_strided_slice %22 {offsets = [32, 0], sizes = [32, 64], strides = [1, 1]} : vector<288x64xf32> to vector<32x64xf32>
    %cst_38 = arith.constant dense<0.000000e+00> : vector<8x64xf32>
    %113 = tpu.matmul %111, %112, %cst_38 {dimension_numbers = #tpu.dot_dimension_numbers<[1], [0], [0], [1], [0, 0, 1, 1], [], []>} : vector<8x32xf32>, vector<32x64xf32>, vector<8x64xf32> -> vector<8x64xf32>
    %114 = arith.addf %110, %113 : vector<8x64xf32>
    %115 = vector.extract_strided_slice %20 {offsets = [28, 0], sizes = [8, 32], strides = [1, 1]} : vector<72x32xf32> to vector<8x32xf32>
    %116 = vector.extract_strided_slice %22 {offsets = [64, 0], sizes = [32, 64], strides = [1, 1]} : vector<288x64xf32> to vector<32x64xf32>
    %cst_39 = arith.constant dense<0.000000e+00> : vector<8x64xf32>
    %117 = tpu.matmul %115, %116, %cst_39 {dimension_numbers = #tpu.dot_dimension_numbers<[1], [0], [0], [1], [0, 0, 1, 1], [], []>} : vector<8x32xf32>, vector<32x64xf32>, vector<8x64xf32> -> vector<8x64xf32>
    %118 = arith.addf %114, %117 : vector<8x64xf32>
    %119 = vector.extract_strided_slice %20 {offsets = [36, 0], sizes = [8, 32], strides = [1, 1]} : vector<72x32xf32> to vector<8x32xf32>
    %120 = vector.extract_strided_slice %22 {offsets = [96, 0], sizes = [32, 64], strides = [1, 1]} : vector<288x64xf32> to vector<32x64xf32>
    %cst_40 = arith.constant dense<0.000000e+00> : vector<8x64xf32>
    %121 = tpu.matmul %119, %120, %cst_40 {dimension_numbers = #tpu.dot_dimension_numbers<[1], [0], [0], [1], [0, 0, 1, 1], [], []>} : vector<8x32xf32>, vector<32x64xf32>, vector<8x64xf32> -> vector<8x64xf32>
    %122 = arith.addf %118, %121 : vector<8x64xf32>
    %123 = vector.extract_strided_slice %20 {offsets = [38, 0], sizes = [8, 32], strides = [1, 1]} : vector<72x32xf32> to vector<8x32xf32>
    %124 = vector.extract_strided_slice %22 {offsets = [128, 0], sizes = [32, 64], strides = [1, 1]} : vector<288x64xf32> to vector<32x64xf32>
    %cst_41 = arith.constant dense<0.000000e+00> : vector<8x64xf32>
    %125 = tpu.matmul %123, %124, %cst_41 {dimension_numbers = #tpu.dot_dimension_numbers<[1], [0], [0], [1], [0, 0, 1, 1], [], []>} : vector<8x32xf32>, vector<32x64xf32>, vector<8x64xf32> -> vector<8x64xf32>
    %126 = arith.addf %122, %125 : vector<8x64xf32>
    %127 = vector.extract_strided_slice %20 {offsets = [40, 0], sizes = [8, 32], strides = [1, 1]} : vector<72x32xf32> to vector<8x32xf32>
    %128 = vector.extract_strided_slice %22 {offsets = [160, 0], sizes = [32, 64], strides = [1, 1]} : vector<288x64xf32> to vector<32x64xf32>
    %cst_42 = arith.constant dense<0.000000e+00> : vector<8x64xf32>
    %129 = tpu.matmul %127, %128, %cst_42 {dimension_numbers = #tpu.dot_dimension_numbers<[1], [0], [0], [1], [0, 0, 1, 1], [], []>} : vector<8x32xf32>, vector<32x64xf32>, vector<8x64xf32> -> vector<8x64xf32>
    %130 = arith.addf %126, %129 : vector<8x64xf32>
    %131 = vector.extract_strided_slice %20 {offsets = [48, 0], sizes = [8, 32], strides = [1, 1]} : vector<72x32xf32> to vector<8x32xf32>
    %132 = vector.extract_strided_slice %22 {offsets = [192, 0], sizes = [32, 64], strides = [1, 1]} : vector<288x64xf32> to vector<32x64xf32>
    %cst_43 = arith.constant dense<0.000000e+00> : vector<8x64xf32>
    %133 = tpu.matmul %131, %132, %cst_43 {dimension_numbers = #tpu.dot_dimension_numbers<[1], [0], [0], [1], [0, 0, 1, 1], [], []>} : vector<8x32xf32>, vector<32x64xf32>, vector<8x64xf32> -> vector<8x64xf32>
    %134 = arith.addf %130, %133 : vector<8x64xf32>
    %135 = vector.extract_strided_slice %20 {offsets = [50, 0], sizes = [8, 32], strides = [1, 1]} : vector<72x32xf32> to vector<8x32xf32>
    %136 = vector.extract_strided_slice %22 {offsets = [224, 0], sizes = [32, 64], strides = [1, 1]} : vector<288x64xf32> to vector<32x64xf32>
    %cst_44 = arith.constant dense<0.000000e+00> : vector<8x64xf32>
    %137 = tpu.matmul %135, %136, %cst_44 {dimension_numbers = #tpu.dot_dimension_numbers<[1], [0], [0], [1], [0, 0, 1, 1], [], []>} : vector<8x32xf32>, vector<32x64xf32>, vector<8x64xf32> -> vector<8x64xf32>
    %138 = arith.addf %134, %137 : vector<8x64xf32>
    %139 = vector.extract_strided_slice %20 {offsets = [52, 0], sizes = [8, 32], strides = [1, 1]} : vector<72x32xf32> to vector<8x32xf32>
    %140 = vector.extract_strided_slice %22 {offsets = [256, 0], sizes = [32, 64], strides = [1, 1]} : vector<288x64xf32> to vector<32x64xf32>
    %cst_45 = arith.constant dense<0.000000e+00> : vector<8x64xf32>
    %141 = tpu.matmul %139, %140, %cst_45 {dimension_numbers = #tpu.dot_dimension_numbers<[1], [0], [0], [1], [0, 0, 1, 1], [], []>} : vector<8x32xf32>, vector<32x64xf32>, vector<8x64xf32> -> vector<8x64xf32>
    %142 = arith.addf %138, %141 : vector<8x64xf32>
    %143 = vector.broadcast %23 : vector<1x64xf32> to vector<8x64xf32>
    %144 = arith.addf %142, %143 : vector<8x64xf32>
    %cst_46 = arith.constant 0.000000e+00 : f32
    %145 = vector.broadcast %cst_46 : f32 to vector<8x64xf32>
    %146 = arith.maximumf %144, %145 : vector<8x64xf32>
    %cst_47 = arith.constant 0.000000e+00 : f32
    %147 = vector.broadcast %cst_47 : f32 to vector<8x64xf32>
    %148 = vector.extract_strided_slice %20 {offsets = [36, 0], sizes = [8, 32], strides = [1, 1]} : vector<72x32xf32> to vector<8x32xf32>
    %149 = vector.extract_strided_slice %22 {offsets = [0, 0], sizes = [32, 64], strides = [1, 1]} : vector<288x64xf32> to vector<32x64xf32>
    %cst_48 = arith.constant dense<0.000000e+00> : vector<8x64xf32>
    %150 = tpu.matmul %148, %149, %cst_48 {dimension_numbers = #tpu.dot_dimension_numbers<[1], [0], [0], [1], [0, 0, 1, 1], [], []>} : vector<8x32xf32>, vector<32x64xf32>, vector<8x64xf32> -> vector<8x64xf32>
    %151 = arith.addf %147, %150 : vector<8x64xf32>
    %152 = vector.extract_strided_slice %20 {offsets = [38, 0], sizes = [8, 32], strides = [1, 1]} : vector<72x32xf32> to vector<8x32xf32>
    %153 = vector.extract_strided_slice %22 {offsets = [32, 0], sizes = [32, 64], strides = [1, 1]} : vector<288x64xf32> to vector<32x64xf32>
    %cst_49 = arith.constant dense<0.000000e+00> : vector<8x64xf32>
    %154 = tpu.matmul %152, %153, %cst_49 {dimension_numbers = #tpu.dot_dimension_numbers<[1], [0], [0], [1], [0, 0, 1, 1], [], []>} : vector<8x32xf32>, vector<32x64xf32>, vector<8x64xf32> -> vector<8x64xf32>
    %155 = arith.addf %151, %154 : vector<8x64xf32>
    %156 = vector.extract_strided_slice %20 {offsets = [40, 0], sizes = [8, 32], strides = [1, 1]} : vector<72x32xf32> to vector<8x32xf32>
    %157 = vector.extract_strided_slice %22 {offsets = [64, 0], sizes = [32, 64], strides = [1, 1]} : vector<288x64xf32> to vector<32x64xf32>
    %cst_50 = arith.constant dense<0.000000e+00> : vector<8x64xf32>
    %158 = tpu.matmul %156, %157, %cst_50 {dimension_numbers = #tpu.dot_dimension_numbers<[1], [0], [0], [1], [0, 0, 1, 1], [], []>} : vector<8x32xf32>, vector<32x64xf32>, vector<8x64xf32> -> vector<8x64xf32>
    %159 = arith.addf %155, %158 : vector<8x64xf32>
    %160 = vector.extract_strided_slice %20 {offsets = [48, 0], sizes = [8, 32], strides = [1, 1]} : vector<72x32xf32> to vector<8x32xf32>
    %161 = vector.extract_strided_slice %22 {offsets = [96, 0], sizes = [32, 64], strides = [1, 1]} : vector<288x64xf32> to vector<32x64xf32>
    %cst_51 = arith.constant dense<0.000000e+00> : vector<8x64xf32>
    %162 = tpu.matmul %160, %161, %cst_51 {dimension_numbers = #tpu.dot_dimension_numbers<[1], [0], [0], [1], [0, 0, 1, 1], [], []>} : vector<8x32xf32>, vector<32x64xf32>, vector<8x64xf32> -> vector<8x64xf32>
    %163 = arith.addf %159, %162 : vector<8x64xf32>
    %164 = vector.extract_strided_slice %20 {offsets = [50, 0], sizes = [8, 32], strides = [1, 1]} : vector<72x32xf32> to vector<8x32xf32>
    %165 = vector.extract_strided_slice %22 {offsets = [128, 0], sizes = [32, 64], strides = [1, 1]} : vector<288x64xf32> to vector<32x64xf32>
    %cst_52 = arith.constant dense<0.000000e+00> : vector<8x64xf32>
    %166 = tpu.matmul %164, %165, %cst_52 {dimension_numbers = #tpu.dot_dimension_numbers<[1], [0], [0], [1], [0, 0, 1, 1], [], []>} : vector<8x32xf32>, vector<32x64xf32>, vector<8x64xf32> -> vector<8x64xf32>
    %167 = arith.addf %163, %166 : vector<8x64xf32>
    %168 = vector.extract_strided_slice %20 {offsets = [52, 0], sizes = [8, 32], strides = [1, 1]} : vector<72x32xf32> to vector<8x32xf32>
    %169 = vector.extract_strided_slice %22 {offsets = [160, 0], sizes = [32, 64], strides = [1, 1]} : vector<288x64xf32> to vector<32x64xf32>
    %cst_53 = arith.constant dense<0.000000e+00> : vector<8x64xf32>
    %170 = tpu.matmul %168, %169, %cst_53 {dimension_numbers = #tpu.dot_dimension_numbers<[1], [0], [0], [1], [0, 0, 1, 1], [], []>} : vector<8x32xf32>, vector<32x64xf32>, vector<8x64xf32> -> vector<8x64xf32>
    %171 = arith.addf %167, %170 : vector<8x64xf32>
    %172 = vector.extract_strided_slice %20 {offsets = [60, 0], sizes = [8, 32], strides = [1, 1]} : vector<72x32xf32> to vector<8x32xf32>
    %173 = vector.extract_strided_slice %22 {offsets = [192, 0], sizes = [32, 64], strides = [1, 1]} : vector<288x64xf32> to vector<32x64xf32>
    %cst_54 = arith.constant dense<0.000000e+00> : vector<8x64xf32>
    %174 = tpu.matmul %172, %173, %cst_54 {dimension_numbers = #tpu.dot_dimension_numbers<[1], [0], [0], [1], [0, 0, 1, 1], [], []>} : vector<8x32xf32>, vector<32x64xf32>, vector<8x64xf32> -> vector<8x64xf32>
    %175 = arith.addf %171, %174 : vector<8x64xf32>
    %176 = vector.extract_strided_slice %20 {offsets = [62, 0], sizes = [8, 32], strides = [1, 1]} : vector<72x32xf32> to vector<8x32xf32>
    %177 = vector.extract_strided_slice %22 {offsets = [224, 0], sizes = [32, 64], strides = [1, 1]} : vector<288x64xf32> to vector<32x64xf32>
    %cst_55 = arith.constant dense<0.000000e+00> : vector<8x64xf32>
    %178 = tpu.matmul %176, %177, %cst_55 {dimension_numbers = #tpu.dot_dimension_numbers<[1], [0], [0], [1], [0, 0, 1, 1], [], []>} : vector<8x32xf32>, vector<32x64xf32>, vector<8x64xf32> -> vector<8x64xf32>
    %179 = arith.addf %175, %178 : vector<8x64xf32>
    %180 = vector.extract_strided_slice %20 {offsets = [64, 0], sizes = [8, 32], strides = [1, 1]} : vector<72x32xf32> to vector<8x32xf32>
    %181 = vector.extract_strided_slice %22 {offsets = [256, 0], sizes = [32, 64], strides = [1, 1]} : vector<288x64xf32> to vector<32x64xf32>
    %cst_56 = arith.constant dense<0.000000e+00> : vector<8x64xf32>
    %182 = tpu.matmul %180, %181, %cst_56 {dimension_numbers = #tpu.dot_dimension_numbers<[1], [0], [0], [1], [0, 0, 1, 1], [], []>} : vector<8x32xf32>, vector<32x64xf32>, vector<8x64xf32> -> vector<8x64xf32>
    %183 = arith.addf %179, %182 : vector<8x64xf32>
    %184 = vector.broadcast %23 : vector<1x64xf32> to vector<8x64xf32>
    %185 = arith.addf %183, %184 : vector<8x64xf32>
    %cst_57 = arith.constant 0.000000e+00 : f32
    %186 = vector.broadcast %cst_57 : f32 to vector<8x64xf32>
    %187 = arith.maximumf %185, %186 : vector<8x64xf32>
    %188 = arith.maximumf %64, %105 : vector<8x64xf32>
    %189 = arith.maximumf %146, %187 : vector<8x64xf32>
    %c0_58 = arith.constant 0 : index
    %c0_59 = arith.constant 0 : index
    %190 = vector.load %arg8[%c0_58, %c0_59] : memref<1x64xf32, #tpu.memory_space<vmem>>, vector<1x64xf32>
    %c0_60 = arith.constant 0 : index
    %c0_61 = arith.constant 0 : index
    %191 = vector.load %arg9[%c0_60, %c0_61] : memref<1x64xf32, #tpu.memory_space<vmem>>, vector<1x64xf32>
    %192 = vector.extract_strided_slice %188 {offsets = [0, 0], sizes = [2, 64], strides = [1, 1]} : vector<8x64xf32> to vector<2x64xf32>
    %193 = vector.extract_strided_slice %188 {offsets = [2, 0], sizes = [2, 64], strides = [1, 1]} : vector<8x64xf32> to vector<2x64xf32>
    %194 = arith.maximumf %192, %193 : vector<2x64xf32>
    %195 = vector.broadcast %190 : vector<1x64xf32> to vector<2x64xf32>
    %196 = arith.mulf %194, %195 : vector<2x64xf32>
    %197 = vector.broadcast %191 : vector<1x64xf32> to vector<2x64xf32>
    %198 = arith.addf %196, %197 : vector<2x64xf32>
    %199 = vector.extract_strided_slice %188 {offsets = [4, 0], sizes = [2, 64], strides = [1, 1]} : vector<8x64xf32> to vector<2x64xf32>
    %200 = vector.extract_strided_slice %188 {offsets = [6, 0], sizes = [2, 64], strides = [1, 1]} : vector<8x64xf32> to vector<2x64xf32>
    %201 = arith.maximumf %199, %200 : vector<2x64xf32>
    %202 = vector.broadcast %190 : vector<1x64xf32> to vector<2x64xf32>
    %203 = arith.mulf %201, %202 : vector<2x64xf32>
    %204 = vector.broadcast %191 : vector<1x64xf32> to vector<2x64xf32>
    %205 = arith.addf %203, %204 : vector<2x64xf32>
    %206 = vector.extract_strided_slice %189 {offsets = [0, 0], sizes = [2, 64], strides = [1, 1]} : vector<8x64xf32> to vector<2x64xf32>
    %207 = vector.extract_strided_slice %189 {offsets = [2, 0], sizes = [2, 64], strides = [1, 1]} : vector<8x64xf32> to vector<2x64xf32>
    %208 = arith.maximumf %206, %207 : vector<2x64xf32>
    %209 = vector.broadcast %190 : vector<1x64xf32> to vector<2x64xf32>
    %210 = arith.mulf %208, %209 : vector<2x64xf32>
    %211 = vector.broadcast %191 : vector<1x64xf32> to vector<2x64xf32>
    %212 = arith.addf %210, %211 : vector<2x64xf32>
    %213 = vector.extract_strided_slice %189 {offsets = [4, 0], sizes = [2, 64], strides = [1, 1]} : vector<8x64xf32> to vector<2x64xf32>
    %214 = vector.extract_strided_slice %189 {offsets = [6, 0], sizes = [2, 64], strides = [1, 1]} : vector<8x64xf32> to vector<2x64xf32>
    %215 = arith.maximumf %213, %214 : vector<2x64xf32>
    %216 = vector.broadcast %190 : vector<1x64xf32> to vector<2x64xf32>
    %217 = arith.mulf %215, %216 : vector<2x64xf32>
    %218 = vector.broadcast %191 : vector<1x64xf32> to vector<2x64xf32>
    %219 = arith.addf %217, %218 : vector<2x64xf32>
    %c0_62 = arith.constant 0 : index
    %c0_63 = arith.constant 0 : index
    %220 = vector.load %arg10[%c0_62, %c0_63] : memref<256x128xbf16, #tpu.memory_space<vmem>>, vector<256x128xbf16>
    %221 = arith.extf %220 : vector<256x128xbf16> to vector<256x128xf32>
    %cst_64 = arith.constant 0.000000e+00 : f32
    %222 = vector.broadcast %cst_64 : f32 to vector<2x128xf32>
    %223 = vector.extract_strided_slice %221 {offsets = [0, 0], sizes = [64, 128], strides = [1, 1]} : vector<256x128xf32> to vector<64x128xf32>
    %cst_65 = arith.constant dense<0.000000e+00> : vector<2x128xf32>
    %224 = tpu.matmul %198, %223, %cst_65 {dimension_numbers = #tpu.dot_dimension_numbers<[1], [0], [0], [1], [0, 0, 1, 1], [], []>} : vector<2x64xf32>, vector<64x128xf32>, vector<2x128xf32> -> vector<2x128xf32>
    %225 = arith.addf %222, %224 : vector<2x128xf32>
    %226 = vector.extract_strided_slice %221 {offsets = [64, 0], sizes = [64, 128], strides = [1, 1]} : vector<256x128xf32> to vector<64x128xf32>
    %cst_66 = arith.constant dense<0.000000e+00> : vector<2x128xf32>
    %227 = tpu.matmul %205, %226, %cst_66 {dimension_numbers = #tpu.dot_dimension_numbers<[1], [0], [0], [1], [0, 0, 1, 1], [], []>} : vector<2x64xf32>, vector<64x128xf32>, vector<2x128xf32> -> vector<2x128xf32>
    %228 = arith.addf %225, %227 : vector<2x128xf32>
    %229 = vector.extract_strided_slice %221 {offsets = [128, 0], sizes = [64, 128], strides = [1, 1]} : vector<256x128xf32> to vector<64x128xf32>
    %cst_67 = arith.constant dense<0.000000e+00> : vector<2x128xf32>
    %230 = tpu.matmul %212, %229, %cst_67 {dimension_numbers = #tpu.dot_dimension_numbers<[1], [0], [0], [1], [0, 0, 1, 1], [], []>} : vector<2x64xf32>, vector<64x128xf32>, vector<2x128xf32> -> vector<2x128xf32>
    %231 = arith.addf %228, %230 : vector<2x128xf32>
    %232 = vector.extract_strided_slice %221 {offsets = [192, 0], sizes = [64, 128], strides = [1, 1]} : vector<256x128xf32> to vector<64x128xf32>
    %cst_68 = arith.constant dense<0.000000e+00> : vector<2x128xf32>
    %233 = tpu.matmul %219, %232, %cst_68 {dimension_numbers = #tpu.dot_dimension_numbers<[1], [0], [0], [1], [0, 0, 1, 1], [], []>} : vector<2x64xf32>, vector<64x128xf32>, vector<2x128xf32> -> vector<2x128xf32>
    %234 = arith.addf %231, %233 : vector<2x128xf32>
    %c0_69 = arith.constant 0 : index
    %c0_70 = arith.constant 0 : index
    %235 = vector.load %arg11[%c0_69, %c0_70] : memref<1x128xf32, #tpu.memory_space<vmem>>, vector<1x128xf32>
    %236 = vector.broadcast %235 : vector<1x128xf32> to vector<2x128xf32>
    %237 = arith.addf %234, %236 : vector<2x128xf32>
    %cst_71 = arith.constant 0.000000e+00 : f32
    %238 = vector.broadcast %cst_71 : f32 to vector<2x128xf32>
    %239 = arith.maximumf %237, %238 : vector<2x128xf32>
    %c0_72 = arith.constant 0 : index
    %c0_73 = arith.constant 0 : index
    %240 = vector.load %arg12[%c0_72, %c0_73] : memref<128x10xbf16, #tpu.memory_space<vmem>>, vector<128x10xbf16>
    %241 = arith.extf %240 : vector<128x10xbf16> to vector<128x10xf32>
    %cst_74 = arith.constant dense<0.000000e+00> : vector<2x10xf32>
    %242 = tpu.matmul %239, %241, %cst_74 {dimension_numbers = #tpu.dot_dimension_numbers<[1], [0], [0], [1], [0, 0, 1, 1], [], []>} : vector<2x128xf32>, vector<128x10xf32>, vector<2x10xf32> -> vector<2x10xf32>
    %c0_75 = arith.constant 0 : index
    %c0_76 = arith.constant 0 : index
    %243 = vector.load %arg13[%c0_75, %c0_76] : memref<1x10xf32, #tpu.memory_space<vmem>>, vector<1x10xf32>
    %244 = vector.broadcast %243 : vector<1x10xf32> to vector<2x10xf32>
    %245 = arith.addf %242, %244 : vector<2x10xf32>
    %cst_77 = arith.constant dense<0xFF800000> : vector<2xf32>
    %246 = vector.multi_reduction <maximumf>, %245, %cst_77 [1] : vector<2x10xf32> to vector<2xf32>
    %247 = vector.shape_cast %246 : vector<2xf32> to vector<2x1xf32>
    %248 = vector.broadcast %247 : vector<2x1xf32> to vector<2x10xf32>
    %249 = arith.subf %245, %248 : vector<2x10xf32>
    %250 = math.exp %249 : vector<2x10xf32>
    %cst_78 = arith.constant dense<0.000000e+00> : vector<2xf32>
    %251 = vector.multi_reduction <add>, %250, %cst_78 [1] : vector<2x10xf32> to vector<2xf32>
    %252 = vector.shape_cast %251 : vector<2xf32> to vector<2x1xf32>
    %253 = tpu.reciprocal %252 : vector<2x1xf32> -> vector<2x1xf32>
    %254 = vector.broadcast %253 : vector<2x1xf32> to vector<2x10xf32>
    %255 = arith.mulf %250, %254 : vector<2x10xf32>
    %c0_79 = arith.constant 0 : index
    %c0_80 = arith.constant 0 : index
    %256 = vector.load %arg14[%c0_79, %c0_80] : memref<2x10xf32, #tpu.memory_space<vmem>>, vector<2x10xf32>
    tpu.vector_store %arg14[%c0_79, %c0_80], %255 {strides = array<i32>} : memref<2x10xf32, #tpu.memory_space<vmem>>, vector<2x10xf32>,
    return
  }
  func.func @transform_0(%arg0: i32) -> (i32, i32) {
    %c0_i32 = arith.constant 0 : i32
    %c0_i32_0 = arith.constant 0 : i32
    return %arg0, %c0_i32 : i32, i32
  }
  func.func @transform_1(%arg0: i32) -> (i32, i32) {
    %c0_i32 = arith.constant 0 : i32
    %c0_i32_0 = arith.constant 0 : i32
    %c0_i32_1 = arith.constant 0 : i32
    return %c0_i32, %c0_i32_0 : i32, i32
  }
  func.func @transform_2(%arg0: i32) -> (i32, i32) {
    %c0_i32 = arith.constant 0 : i32
    %c0_i32_0 = arith.constant 0 : i32
    %c0_i32_1 = arith.constant 0 : i32
    return %c0_i32, %c0_i32_0 : i32, i32
  }
  func.func @transform_3(%arg0: i32) -> (i32, i32) {
    %c0_i32 = arith.constant 0 : i32
    %c0_i32_0 = arith.constant 0 : i32
    %c0_i32_1 = arith.constant 0 : i32
    return %c0_i32, %c0_i32_0 : i32, i32
  }
  func.func @transform_4(%arg0: i32) -> (i32, i32) {
    %c0_i32 = arith.constant 0 : i32
    %c0_i32_0 = arith.constant 0 : i32
    %c0_i32_1 = arith.constant 0 : i32
    return %c0_i32, %c0_i32_0 : i32, i32
  }
  func.func @transform_5(%arg0: i32) -> (i32, i32) {
    %c0_i32 = arith.constant 0 : i32
    %c0_i32_0 = arith.constant 0 : i32
    %c0_i32_1 = arith.constant 0 : i32
    return %c0_i32, %c0_i32_0 : i32, i32
  }
  func.func @transform_6(%arg0: i32) -> (i32, i32) {
    %c0_i32 = arith.constant 0 : i32
    %c0_i32_0 = arith.constant 0 : i32
    %c0_i32_1 = arith.constant 0 : i32
    return %c0_i32, %c0_i32_0 : i32, i32
  }
  func.func @transform_7(%arg0: i32) -> (i32, i32) {
    %c0_i32 = arith.constant 0 : i32
    %c0_i32_0 = arith.constant 0 : i32
    %c0_i32_1 = arith.constant 0 : i32
    return %c0_i32, %c0_i32_0 : i32, i32
  }
  func.func @transform_8(%arg0: i32) -> (i32, i32) {
    %c0_i32 = arith.constant 0 : i32
    %c0_i32_0 = arith.constant 0 : i32
    %c0_i32_1 = arith.constant 0 : i32
    return %c0_i32, %c0_i32_0 : i32, i32
  }
  func.func @transform_9(%arg0: i32) -> (i32, i32) {
    %c0_i32 = arith.constant 0 : i32
    %c0_i32_0 = arith.constant 0 : i32
    %c0_i32_1 = arith.constant 0 : i32
    return %c0_i32, %c0_i32_0 : i32, i32
  }
  func.func @transform_10(%arg0: i32) -> (i32, i32) {
    %c0_i32 = arith.constant 0 : i32
    %c0_i32_0 = arith.constant 0 : i32
    %c0_i32_1 = arith.constant 0 : i32
    return %c0_i32, %c0_i32_0 : i32, i32
  }
  func.func @transform_11(%arg0: i32) -> (i32, i32) {
    %c0_i32 = arith.constant 0 : i32
    %c0_i32_0 = arith.constant 0 : i32
    %c0_i32_1 = arith.constant 0 : i32
    return %c0_i32, %c0_i32_0 : i32, i32
  }
  func.func @transform_12(%arg0: i32) -> (i32, i32) {
    %c0_i32 = arith.constant 0 : i32
    %c0_i32_0 = arith.constant 0 : i32
    %c0_i32_1 = arith.constant 0 : i32
    return %c0_i32, %c0_i32_0 : i32, i32
  }
  func.func @transform_13(%arg0: i32) -> (i32, i32) {
    %c0_i32 = arith.constant 0 : i32
    %c0_i32_0 = arith.constant 0 : i32
    return %arg0, %c0_i32 : i32, i32
  }
}

</mosaic_0001>

<bundles_post_ra>
// kernel: forward.1
= control target key start
LH: loop header
LB: loop body
LE: loop exit
PB: predicated region body
PF: predicated region fallthrough
CT: control target
= control target key end

     0   :  { %v4923_v1 = vmov 0.0   ;;  %vm4924_vm0 = vmmov 0   ;;  %vm93_vm1 = vcmask 130048   ;;  %s5673_s0 = inlined_call_operand.vmem [shape: bf16[72,16], index: 0, kind: input, shape index: {}]   ;;  %s5674_s1 = inlined_call_operand.vmem [shape: bf16[16,128], index: 1, kind: input, shape index: {}]   ;;  %s5675_s2 = inlined_call_operand.vmem [shape: f32[1,128], index: 2, kind: input, shape index: {}]   ;;  %s5676_s3 = inlined_call_operand.vmem [shape: f32[1,32], index: 3, kind: input, shape index: {}]   ;;  %s5677_s4 = inlined_call_operand.vmem [shape: f32[1,32], index: 4, kind: input, shape index: {}]   ;;  %s5678_s5 = inlined_call_operand.vmem [shape: bf16[288,64], index: 5, kind: input, shape index: {}]   ;;  %s5679_s6 = inlined_call_operand.vmem [shape: f32[1,64], index: 6, kind: input, shape index: {}]   ;;  %s5680_s7 = inlined_call_operand.vmem [shape: f32[1,64], index: 7, kind: input, shape index: {}]   ;;  %s5681_s8 = inlined_call_operand.vmem [shape: f32[1,64], index: 8, kind: input, shape index: {}]   ;;  %s5682_s9 = inlined_call_operand.vmem [shape: bf16[256,128], index: 9, kind: input, shape index: {}]   ;;  %s5683_s10 = inlined_call_operand.vmem [shape: f32[1,128], index: 10, kind: input, shape index: {}]   ;;  %s5684_s11 = inlined_call_operand.vmem [shape: bf16[128,10], index: 11, kind: input, shape index: {}]   ;;  %s5685_s12 = inlined_call_operand.vmem [shape: f32[1,10], index: 12, kind: input, shape index: {}]   ;;  %s5686_s13 = inlined_call_operand.hbm [shape: f32[2,10], index: 13, kind: output, shape index: {}]  }
   0x1   :  { %v4889_v0 = vld [vmem:[%s5674_s1] sm:$0xff]   ;;  %4066 = vmatprep.subr.bf16.mxu0 %v4923_v1  ;;  %4068 = vmatprep.mubr.msk.bf16.mxu0 %vm4924_vm0, %v4923_v1 }
   0x2   :  { %v4890_v2 = vld [vmem:[%s5673_s0] sm:$0xff]   ;;  %4067 = vmatpush3.bf16.msra.mxu0 %v4889_v0  ;;  %4096 = vmatprep.mubr.msk.f32.mxu1 %vm4924_vm0, %v4923_v1 }
   0x5   :  { %4069 = vmatmul.mubr.msk.bf16.vlgmr.msra.gmra.mrb[0].mxu0 %vm93_vm1, %v4890_v2 }
   0x6   :  { %4072 = vmatprep.mubr.msk.bf16.mxu0 %vm4924_vm0, %v4923_v1 }
   0x7   :  { %18 = vsyncpa [#allocation3], 0  ;;  %v4891_v3 = vld [vmem:[%s5673_s0 + $0x8] sm:$0xff]   ;;  %v4892_v4 = vld [vmem:[%s5673_s0 + $0x10] sm:$0xff]   ;;  %s4925_s21 = smov 96   ;;  %v4926_v42 = vmov 0.0|0.0  }
   0x8   :  { %v4893_v5 = vld [vmem:[%s5673_s0 + $0x18] sm:$0xff]   ;;  %v4894_v6 = vld [vmem:[%s5673_s0 + $0x20] ss:$0 sps:$4 sm:$0xff]   ;;  %4595 = vmatprep.subr.bf16.mxu1 %v4926_v42  ;;  %v5050_v43 = vld [vmem:[%s5678_s5 + $0x10] sm:$0xff]   ;;  %4625 = vmatprep.subr.bf16.mxu0 %v4926_v42  ;;  %s4927_s28 = smov 64   ;;  %vm387_vm2 = vcmask 1045504  }
   0x9   :  { %v3561_v7 = vld [vmem:[%s5675_s2] ss:$0 sm:$0xff]  ;;  %4597 = vmatpush3.bf16.msra.mxu1 %v5050_v43  ;;  %v5057_v44 = vld [vmem:[%s5678_s5 + $0x50] sm:$0xff]   ;;  %v5064_v45 = vld [vmem:[%s5678_s5 + $0x18] sm:$0xff]   ;;  %vm391_vm3 = vcmask 261120   ;;  %vm536_vm4 = vcmask 1043456  }
   0xa   :  { %4598 = vmatprep.subr.bf16.mxu1 %v4926_v42  ;;  %4627 = vmatpush3.bf16.msra.mxu0 %v5057_v44  ;;  %v5071_v47 = vld [vmem:[%s5678_s5 + $0x58] sm:$0xff]   ;;  %v5093_v61 = vld [vmem:[%s5676_s3] ss:$0 sm:$0xff]  ;;  %vm689_vm5 = vcmask 1041408   ;;  %vm3123_vm6 = vcmask 523264   ;;  %vm3534_vm7 = vcmask 74752  }
   0xb   :  { %4628 = vmatprep.subr.bf16.mxu0 %v4926_v42  ;;  %v5099_v2 = vld [vmem:[%s5677_s4] ss:$0 sm:$0xff] }
   0xd   :  { %4073 = vmatmul.mubr.msk.bf16.gmra.mrb[4].mxu0 %vm93_vm1, %v4891_v3  ;;  %4600 = vmatpush3.bf16.msra.mxu1 %v5064_v45 }
   0xe   :  { %4076 = vmatprep.mubr.msk.bf16.mxu0 %vm4924_vm0, %v4923_v1  ;;  %4601 = vmatprep.subr.bf16.mxu1 %v4926_v42 }
   0xf   :  { %4630 = vmatpush3.bf16.msra.mxu0 %v5071_v47 }
  0x10   :  { %4637 = vmatprep.subr.bf16.mxu0 %v4926_v42 }
  0x15   :  { %4077 = vmatmul.mubr.msk.bf16.gmra.mrb[8].mxu0 %vm93_vm1, %v4892_v4 }
  0x16   :  { %4080 = vmatprep.mubr.msk.bf16.mxu0 %vm4924_vm0, %v4923_v1 }
  0x1d   :  { %4081 = vmatmul.mubr.msk.bf16.gmra.mrb[12].mxu0 %vm93_vm1, %v4893_v5 }
  0x1e   :  { %4084 = vmatprep.mubr.msk.bf16.mxu0 %vm4924_vm0, %v4923_v1 }
  0x25   :  { %4085 = vmatmul.mubr.msk.bf16.gmra.mrb[16].mxu0 %vm93_vm1, %v4894_v6 }
  0x26   :  { %4151 = vmatprep.mubr.msk.f32.mxu0 %vm4924_vm0, %v4923_v1 }
  0xd8   :  { %v143_v8 = vpop.f32.mrb[0].mxu0 }
  0xd9   :  { %v144_v9 = vadd.f32 %v3561_v7, %v143_v8  ;;  %v4070_v10 = vpop.f32.mrb[1].mxu0 }
  0xda   :  { %v146_v11 = vpop.f32.mrb[2].mxu0 }
  0xdb   :  { %v181_v12 = vmax.f32 %v144_v9, 0.0  ;;  %v147_v13 = vadd.f32 %v3561_v7, %v146_v11  ;;  %v4071_v14 = vpop.f32.mrb[3].mxu0 }
  0xdd   :  { %199 = vrot.lane.b32.xlu0 %v181_v12, %s4925_s21  ;;  %v182_v15 = vmax.f32 %v147_v13, 0.0 }
  0xe0   :  { %v151_v16 = vpop.f32.mrb[4].mxu0 }
  0xe1   :  { %v152_v17 = vadd.f32 %v3561_v7, %v151_v16  ;;  %201 = vrot.lane.b32.xlu0 %v182_v15, %s4925_s21  ;;  %v4074_v18 = vpop.f32.mrb[5].mxu0  ;;  %v5118_v16 = vld [vmem:[%s5678_s5] sm:$0xff]  }
  0xe2   :  { %v154_v19 = vpop.f32.mrb[6].mxu0 }
  0xe3   :  { %v183_v20 = vmax.f32 %v152_v17, 0.0  ;;  %v155_v21 = vadd.f32 %v3561_v7, %v154_v19  ;;  %v4075_v22 = vpop.f32.mrb[7].mxu0 }
  0xe5   :  { %v184_v23 = vmax.f32 %v155_v21, 0.0  ;;  %203 = vrot.lane.b32.xlu1 %v183_v20, %s4925_s21 }
  0xe8   :  { %v159_v24 = vpop.f32.mrb[8].mxu0 }
  0xe9   :  { %v160_v25 = vadd.f32 %v3561_v7, %v159_v24  ;;  %205 = vrot.lane.b32.xlu1 %v184_v23, %s4925_s21  ;;  %v4078_v26 = vpop.f32.mrb[9].mxu0  ;;  %v5138_v24 = vld [vmem:[%s5678_s5 + $0x8] sm:$0xff]  }
  0xea   :  { %v162_v27 = vpop.f32.mrb[10].mxu0 }
  0xeb   :  { %v185_v28 = vmax.f32 %v160_v25, 0.0  ;;  %v163_v29 = vadd.f32 %v3561_v7, %v162_v27  ;;  %v4079_v30 = vpop.f32.mrb[11].mxu0  ;;  %v5149_v27 = vld [vmem:[%s5678_s5 + $0x78] sm:$0xff]  }
  0xed   :  { %207 = vrot.lane.b32.xlu0 %v185_v28, %s4925_s21  ;;  %v186_v50 = vmax.f32 %v163_v29, 0.0 }
  0xf0   :  { %v167_v31 = vpop.f32.mrb[12].mxu0 }
  0xf1   :  { %v5040_v32 = vadd.f32 %v3561_v7, %v167_v31  ;;  %v4082_v33 = vpop.f32.mrb[13].mxu0  ;;  %v5164_v31 = vld [vmem:[%s5678_s5 + $0x20] sm:$0xff]  }
  0xf2   :  { %v170_v34 = vpop.f32.mrb[14].mxu0 }
  0xf3   :  { %v5042_v35 = vadd.f32 %v3561_v7, %v170_v34  ;;  %v4083_v36 = vpop.f32.mrb[15].mxu0  ;;  %v187_v56 = vmax.f32 %v5040_v32, 0.0 }
  0xf5   :  { %v188_v59 = vmax.f32 %v5042_v35, 0.0 }
  0xf8   :  { %v175_v37 = vpop.f32.mrb[16].mxu0 }
  0xf9   :  { %v5044_v38 = vadd.f32 %v3561_v7, %v175_v37  ;;  %v4086_v39 = vpop.f32.mrb[17].mxu0  ;;  %v5184_v37 = vld [vmem:[%s5678_s5 + $0x28] sm:$0xff]  }
  0xfa   :  { %v178_v40 = vpop.f32.mrb[18].mxu0 }
  0xfb   :  { %v4087_v41 = vpop.f32.mrb[19].mxu0  ;;  %v189_v60 = vmax.f32 %v5044_v38, 0.0  ;;  %v5207_v38 = vld [vmem:[%s5678_s5 + $0x30] sm:$0xff]  }
 0x14f   :  { %v200_v46 = vpop.permute.xlu0 %199 }
 0x150   :  { %v226_v48 = vmax.f32 %v181_v12, %v200_v46 }
 0x152   :  { %244 = vrot.lane.b32.xlu1 %v226_v48, %s4927_s28 }
 0x153   :  { %v202_v49 = vpop.permute.xlu0 %201 }
 0x154   :  { %v227_v51 = vmax.f32 %v182_v15, %v202_v49 }
 0x156   :  { %246 = vrot.lane.b32.xlu0 %v227_v51, %s4927_s28  ;;  %209 = vrot.lane.b32.xlu1 %v186_v50, %s4925_s21 }
 0x157   :  { %v204_v52 = vpop.permute.xlu1 %203 }
 0x158   :  { %v228_v53 = vmax.f32 %v183_v20, %v204_v52  ;;  %v5127_v20 = vld [vmem:[%s5678_s5 + $0x70] sm:$0xff]  }
 0x15a   :  { %248 = vrot.lane.b32.xlu0 %v228_v53, %s4927_s28 }
 0x15b   :  { %v206_v54 = vpop.permute.xlu1 %205 }
 0x15c   :  { %v229_v55 = vmax.f32 %v184_v23, %v206_v54  ;;  %v5237_v54 = vld [vmem:[%s5678_s5 + $0x40] sm:$0xff]  }
 0x15e   :  { %250 = vrot.lane.b32.xlu1 %v229_v55, %s4927_s28 }
 0x15f   :  { %v208_v57 = vpop.permute.xlu0 %207 }
 0x160   :  { %v230_v58 = vmax.f32 %v185_v28, %v208_v57  ;;  %v5263_v57 = vld [vmem:[%s5678_s5 + $0x60] sm:$0xff]  }
 0x162   :  { %252 = vrot.lane.b32.xlu0 %v230_v58, %s4927_s28  ;;  %211 = vrot.lane.b32.xlu1 %v187_v56, %s4925_s21 }
 0x166   :  { %213 = vrot.lane.b32.xlu0 %v188_v59, %s4925_s21 }
 0x16a   :  { %215 = vrot.lane.b32.xlu0 %v189_v60, %s4925_s21 }
 0x1c4   :  { %v245_v62 = vpop.permute.xlu1 %244 }
 0x1c5   :  { %v271_v63 = vmax.f32 %v226_v48, %v245_v62 }
 0x1c7   :  { %v287_v0 = vmul.f32 %v5093_v61, %v271_v63 }
 0x1c8   :  { %v247_v3 = vpop.permute.xlu0 %246  ;;  %v210_v4 = vpop.permute.xlu1 %209 }
 0x1c9   :  { %v272_v5 = vmax.f32 %v227_v51, %v247_v3  ;;  %v5101_v6 = vmax.f32 %v186_v50, %v210_v4  ;;  %v5104_v7 = vadd.f32 %v5099_v2, %v287_v0  ;;  %v5223_v51 = vld [vmem:[%s5678_s5 + $0x38] sm:$0xff]  }
 0x1cb   :  { %v288_v8 = vmul.f32 %v5093_v61, %v272_v5  ;;  %254 = vrot.lane.b32.xlu1 %v5101_v6, %s4927_s28  ;;  %v388_v13 = vrot.slane %v5104_v7, 2  ;;  %v537_v46 = vrot.slane %v5104_v7, 4 }
 0x1cc   :  { %v249_v9 = vpop.permute.xlu0 %248 }
 0x1cd   :  { %v5110_v10 = vadd.f32 %v5099_v2, %v288_v8  ;;  %v273_v11 = vmax.f32 %v228_v53, %v249_v9 }
 0x1cf   :  { %v289_v12 = vmul.f32 %v5093_v61, %v273_v11  ;;  %v389_v14 = vrot.slane %v5110_v10, 2  ;;  %v538_v39 = vrot.slane %v5110_v10, 4  ;;  %v690_v50 = vrot.slane %v5110_v10, 6 }
 0x1d0   :  { %v251_v15 = vpop.permute.xlu1 %250 }
 0x1d1   :  { %v5121_v17 = vadd.f32 %v5099_v2, %v289_v12  ;;  %v274_v18 = vmax.f32 %v229_v55, %v251_v15  ;;  %v390_v19 = vsel %vm387_vm2, %v388_v13, %v389_v14  ;;  %v539_v48 = vsel %vm536_vm4, %v537_v46, %v538_v39 }
 0x1d2   :  { %4097 = vmatmul.mubr.msk.f32.vlgmr.msra.gmra.mrb[0].mxu1 %vm391_vm3, %v390_v19 }
 0x1d3   :  { %v290_v21 = vmul.f32 %v5093_v61, %v274_v18  ;;  %4603 = vmatpush3.bf16.msra.mxu1 %v5118_v16  ;;  %4152 = vmatmul.mubr.msk.f32.vlgmr.msra.gmra.mrb[20].mxu0 %vm391_vm3, %v5121_v17  ;;  %v691_v49 = vrot.slane %v5121_v17, 6  ;;  %v614_v53 = vrot.slane %v5121_v17, 4 }
 0x1d4   :  { %v253_v22 = vpop.permute.xlu0 %252  ;;  %v212_v23 = vpop.permute.xlu1 %211  ;;  %4604 = vmatprep.subr.bf16.mxu1 %v4926_v42  ;;  %4639 = vmatpush3.bf16.msra.mxu0 %v5127_v20 }
 0x1d5   :  { %v275_v25 = vmax.f32 %v230_v58, %v253_v22  ;;  %v5141_v26 = vmax.f32 %v187_v56, %v212_v23  ;;  %4107 = vmatprep.mubr.msk.f32.mxu1 %vm4924_vm0, %v4923_v1  ;;  %4640 = vmatprep.subr.bf16.mxu0 %v4926_v42  ;;  %v5154_v28 = vadd.f32 %v5099_v2, %v290_v21  ;;  %v5250_v56 = vld [vmem:[%s5678_s5 + $0x48] sm:$0xff]  }
 0x1d6   :  { %4173 = vmatprep.mubr.msk.f32.mxu0 %vm4924_vm0, %v4923_v1  ;;  %v692_v52 = vsel %vm689_vm5, %v690_v50, %v691_v49  ;;  %v615_v55 = vsel %vm536_vm4, %v538_v39, %v614_v53  ;;  %v5274_v58 = vld [vmem:[%s5678_s5 + $0x68] sm:$0xff]  }
 0x1d7   :  { %v291_v29 = vmul.f32 %v5093_v61, %v275_v25  ;;  %4606 = vmatpush3.bf16.msra.mxu1 %v5138_v24  ;;  %256 = vrot.lane.b32.xlu1 %v5141_v26, %s4927_s28  ;;  %v914_v35 = vrot.slane %v5154_v28, 2  ;;  %v990_v63 = vrot.slane %v5154_v28, 4 }
 0x1d8   :  { %v214_v30 = vpop.permute.xlu0 %213  ;;  %4607 = vmatprep.subr.bf16.mxu1 %v4926_v42  ;;  %4642 = vmatpush3.bf16.msra.mxu0 %v5149_v27 }
 0x1d9   :  { %v5168_v32 = vadd.f32 %v5099_v2, %v291_v29  ;;  %v5170_v33 = vmax.f32 %v188_v59, %v214_v30  ;;  %4649 = vmatprep.subr.bf16.mxu0 %v4926_v42  ;;  %v5287_v59 = vld [vmem:[%s5678_s5 + $0x80] sm:$0xff]  }
 0x1da   :  { %4108 = vmatmul.mubr.msk.f32.vlgmr.msra.gmra.mrb[2].mxu1 %vm391_vm3, %v5104_v7 }
 0x1db   :  { %v915_v34 = vrot.slane %v5168_v32, 2  ;;  %4609 = vmatpush3.bf16.msra.mxu1 %v5164_v31  ;;  %258 = vrot.lane.b32.xlu0 %v5170_v33, %s4927_s28  ;;  %v991_v62 = vrot.slane %v5168_v32, 4  ;;  %v1574_v8 = vrot.slane %v5168_v32, 6 }
 0x1dc   :  { %v216_v36 = vpop.permute.xlu0 %215  ;;  %4610 = vmatprep.subr.bf16.mxu1 %v4926_v42  ;;  %4118 = vmatprep.mubr.msk.f32.mxu1 %vm4924_vm0, %v4923_v1 }
 0x1dd   :  { %v5191_v40 = vmax.f32 %v189_v60, %v216_v36  ;;  %v5194_v41 = vsel %vm387_vm2, %v914_v35, %v915_v34  ;;  %v5301_v60 = vld [vmem:[%s5678_s5 + $0x88] sm:$0xff]   ;;  %v992_v0 = vsel %vm536_vm4, %v990_v63, %v991_v62  ;;  %v3810_v35 = vld [vmem:[%s5682_s9 + $0x30] sm:$0xff]  }
 0x1de   :  { %4174 = vmatmul.mubr.msk.f32.vlgmr.msra.gmra.mrb[22].mxu0 %vm391_vm3, %v5194_v41  ;;  %v3809_v34 = vld [vmem:[%s5682_s9 + $0x28] sm:$0xff]  }
 0x1df   :  { %4612 = vmatpush3.bf16.msra.mxu1 %v5184_v37  ;;  %4651 = vmatpush3.bf16.msra.mxu0 %v5050_v43 }
 0x1e0   :  { %260 = vrot.lane.b32.xlu1 %v5191_v40, %s4927_s28  ;;  %4613 = vmatprep.subr.bf16.mxu1 %v4926_v42 }
 0x1e1   :  { %4652 = vmatprep.subr.bf16.mxu0 %v4926_v42  ;;  %4195 = vmatprep.mubr.msk.f32.mxu0 %vm4924_vm0, %v4923_v1 }
 0x1e2   :  { %4119 = vmatmul.mubr.msk.f32.vlgmr.msra.gmra.mrb[4].mxu1 %vm391_vm3, %v539_v48 }
 0x1e3   :  { %4615 = vmatpush3.bf16.msra.mxu1 %v5207_v38  ;;  %4654 = vmatpush3.bf16.msra.mxu0 %v5064_v45 }
 0x1e4   :  { %4616 = vmatprep.subr.bf16.mxu1 %v4926_v42  ;;  %4661 = vmatprep.subr.bf16.mxu0 %v4926_v42 }
 0x1e5   :  { %4129 = vmatprep.mubr.msk.f32.mxu1 %vm4924_vm0, %v4923_v1 }
 0x1e6   :  { %4196 = vmatmul.mubr.msk.f32.vlgmr.msra.gmra.mrb[24].mxu0 %vm391_vm3, %v692_v52 }
 0x1e7   :  { %4618 = vmatpush3.bf16.msra.mxu1 %v5223_v51  ;;  %4663 = vmatpush3.bf16.msra.mxu0 %v5164_v31 }
 0x1e8   :  { %4619 = vmatprep.subr.bf16.mxu1 %v4926_v42  ;;  %4664 = vmatprep.subr.bf16.mxu0 %v4926_v42 }
 0x1e9   :  { %4217 = vmatprep.mubr.msk.f32.mxu0 %vm4924_vm0, %v4923_v1 }
 0x1ea   :  { %4130 = vmatmul.mubr.msk.f32.vlgmr.msra.gmra.mrb[6].mxu1 %vm391_vm3, %v615_v55 }
 0x1eb   :  { %4621 = vmatpush3.bf16.msra.mxu1 %v5237_v54  ;;  %4666 = vmatpush3.bf16.msra.mxu0 %v5184_v37 }
 0x1ec   :  { %4622 = vmatprep.subr.bf16.mxu1 %v4926_v42  ;;  %4673 = vmatprep.subr.bf16.mxu0 %v4926_v42 }
 0x1ed   :  { %4140 = vmatprep.mubr.msk.f32.mxu1 %vm4924_vm0, %v4923_v1 }
 0x1ee   :  { %4218 = vmatmul.mubr.msk.f32.vlgmr.msra.gmra.mrb[26].mxu0 %vm391_vm3, %v5121_v17 }
 0x1ef   :  { %4624 = vmatpush3.bf16.msra.mxu1 %v5250_v56  ;;  %4675 = vmatpush3.bf16.msra.mxu0 %v5237_v54 }
 0x1f0   :  { %4631 = vmatprep.subr.bf16.mxu1 %v4926_v42  ;;  %4676 = vmatprep.subr.bf16.mxu0 %v4926_v42 }
 0x1f1   :  { %4239 = vmatprep.mubr.msk.f32.mxu0 %vm4924_vm0, %v4923_v1 }
 0x1f2   :  { %4141 = vmatmul.mubr.msk.f32.vlgmr.msra.gmra.mrb[8].mxu1 %vm391_vm3, %v692_v52 }
 0x1f3   :  { %4633 = vmatpush3.bf16.msra.mxu1 %v5263_v57  ;;  %4678 = vmatpush3.bf16.msra.mxu0 %v5250_v56 }
 0x1f4   :  { %4634 = vmatprep.subr.bf16.mxu1 %v4926_v42  ;;  %4162 = vmatprep.mubr.msk.f32.mxu1 %vm4924_vm0, %v4923_v1 }
 0x1f5   :  { %4685 = vmatprep.subr.bf16.mxu0 %v4926_v42 }
 0x1f6   :  { %4240 = vmatmul.mubr.msk.f32.vlgmr.msra.gmra.mrb[28].mxu0 %vm391_vm3, %v5194_v41 }
 0x1f7   :  { %4636 = vmatpush3.bf16.msra.mxu1 %v5274_v58  ;;  %4687 = vmatpush3.bf16.msra.mxu0 %v5263_v57 }
 0x1f8   :  { %4643 = vmatprep.subr.bf16.mxu1 %v4926_v42  ;;  %4688 = vmatprep.subr.bf16.mxu0 %v4926_v42 }
 0x1f9   :  { %4261 = vmatprep.mubr.msk.f32.mxu0 %vm4924_vm0, %v4923_v1 }
 0x1fa   :  { %4163 = vmatmul.mubr.msk.f32.vlgmr.msra.gmra.mrb[10].mxu1 %vm391_vm3, %v5154_v28 }
 0x1fb   :  { %4645 = vmatpush3.bf16.msra.mxu1 %v5287_v59  ;;  %4184 = vmatprep.mubr.msk.f32.mxu1 %vm4924_vm0, %v4923_v1 }
 0x1fc   :  { %4646 = vmatprep.subr.bf16.mxu1 %v4926_v42  ;;  %4690 = vmatpush3.bf16.msra.mxu0 %v5274_v58 }
 0x1fd   :  { %4697 = vmatprep.subr.bf16.mxu0 %v4926_v42 }
 0x1ff   :  { %4648 = vmatpush3.bf16.msra.mxu1 %v5301_v60 }
 0x200   :  { %4655 = vmatprep.subr.bf16.mxu1 %v4926_v42 }
 0x202   :  { %4185 = vmatmul.mubr.msk.f32.vlgmr.msra.gmra.mrb[12].mxu1 %vm391_vm3, %v992_v0 }
 0x203   :  { %4657 = vmatpush3.bf16.msra.mxu1 %v5118_v16  ;;  %4206 = vmatprep.mubr.msk.f32.mxu1 %vm4924_vm0, %v4923_v1 }
 0x204   :  { %4658 = vmatprep.subr.bf16.mxu1 %v4926_v42 }
 0x207   :  { %4660 = vmatpush3.bf16.msra.mxu1 %v5138_v24 }
 0x208   :  { %4667 = vmatprep.subr.bf16.mxu1 %v4926_v42 }
 0x20a   :  { %4207 = vmatmul.mubr.msk.f32.vlgmr.msra.gmra.mrb[14].mxu1 %vm391_vm3, %v615_v55 }
 0x20b   :  { %4669 = vmatpush3.bf16.msra.mxu1 %v5207_v38  ;;  %4228 = vmatprep.mubr.msk.f32.mxu1 %vm4924_vm0, %v4923_v1 }
 0x20c   :  { %4670 = vmatprep.subr.bf16.mxu1 %v4926_v42 }
 0x20f   :  { %4672 = vmatpush3.bf16.msra.mxu1 %v5223_v51 }
 0x210   :  { %4679 = vmatprep.subr.bf16.mxu1 %v4926_v42 }
 0x212   :  { %4229 = vmatmul.mubr.msk.f32.vlgmr.msra.gmra.mrb[16].mxu1 %vm391_vm3, %v5154_v28 }
 0x213   :  { %4681 = vmatpush3.bf16.msra.mxu1 %v5057_v44  ;;  %4250 = vmatprep.mubr.msk.f32.mxu1 %vm4924_vm0, %v4923_v1 }
 0x214   :  { %4682 = vmatprep.subr.bf16.mxu1 %v4926_v42 }
 0x217   :  { %4684 = vmatpush3.bf16.msra.mxu1 %v5071_v47 }
 0x218   :  { %4691 = vmatprep.subr.bf16.mxu1 %v4926_v42 }
 0x21a   :  { %4251 = vmatmul.mubr.msk.f32.vlgmr.msra.gmra.mrb[18].mxu1 %vm391_vm3, %v992_v0 }
 0x21b   :  { %4693 = vmatpush3.bf16.msra.mxu1 %v5127_v20  ;;  %4272 = vmatprep.mubr.msk.f32.mxu1 %vm4924_vm0, %v4923_v1 }
 0x21c   :  { %4694 = vmatprep.subr.bf16.mxu1 %v4926_v42 }
 0x21f   :  { %4696 = vmatpush3.bf16.msra.mxu1 %v5149_v27 }
 0x220   :  { %4703 = vmatprep.subr.bf16.mxu1 %v4926_v42 }
 0x23d   :  { %v255_v3 = vpop.permute.xlu1 %254 }
 0x23e   :  { %v276_v4 = vmax.f32 %v5101_v6, %v255_v3 }
 0x240   :  { %v292_v5 = vmul.f32 %v5093_v61, %v276_v4 }
 0x242   :  { %v5342_v7 = vadd.f32 %v5099_v2, %v292_v5 }
 0x244   :  { %v1499_v9 = vrot.slane %v5342_v7, 4  ;;  %v1575_v10 = vrot.slane %v5342_v7, 6 }
 0x246   :  { %v5348_v11 = vsel %vm536_vm4, %v991_v62, %v1499_v9  ;;  %v5351_v12 = vsel %vm689_vm5, %v1574_v8, %v1575_v10 }
 0x247   :  { %4262 = vmatmul.mubr.msk.f32.vlgmr.msra.gmra.mrb[30].mxu0 %vm391_vm3, %v5348_v11  ;;  %4273 = vmatmul.mubr.msk.f32.vlgmr.msra.gmra.mrb[20].mxu1 %vm391_vm3, %v5351_v12 }
 0x248   :  { %4699 = vmatpush3.bf16.msra.mxu0 %v5287_v59  ;;  %4705 = vmatpush3.bf16.msra.mxu1 %v5050_v43 }
 0x249   :  { %4700 = vmatprep.subr.bf16.mxu0 %v4926_v42  ;;  %4706 = vmatprep.subr.bf16.mxu1 %v4926_v42  ;;  %v257_v6 = vpop.permute.xlu1 %256 }
 0x24a   :  { %4283 = vmatprep.mubr.msk.f32.mxu0 %vm4924_vm0, %v4923_v1  ;;  %4294 = vmatprep.mubr.msk.f32.mxu1 %vm4924_vm0, %v4923_v1  ;;  %v277_v14 = vmax.f32 %v5141_v26, %v257_v6 }
 0x24c   :  { %4702 = vmatpush3.bf16.msra.mxu0 %v5301_v60  ;;  %4708 = vmatpush3.bf16.msra.mxu1 %v5064_v45  ;;  %v293_v17 = vmul.f32 %v5093_v61, %v277_v14 }
 0x24d   :  { %4709 = vmatprep.subr.bf16.mxu0 %v4926_v42  ;;  %4715 = vmatprep.subr.bf16.mxu1 %v4926_v42  ;;  %v259_v13 = vpop.permute.xlu0 %258 }
 0x24e   :  { %v278_v15 = vmax.f32 %v5170_v33, %v259_v13  ;;  %v309_v19 = vadd.f32 %v5099_v2, %v293_v17 }
 0x24f   :  { %4284 = vmatmul.mubr.msk.f32.vlgmr.msra.gmra.mrb[32].mxu0 %vm391_vm3, %v5342_v7  ;;  %4295 = vmatmul.mubr.msk.f32.vlgmr.msra.gmra.mrb[22].mxu1 %vm391_vm3, %v5194_v41 }
 0x250   :  { %4711 = vmatpush3.bf16.msra.mxu0 %v5118_v16  ;;  %4717 = vmatpush3.bf16.msra.mxu1 %v5164_v31  ;;  %v294_v18 = vmul.f32 %v5093_v61, %v278_v15  ;;  %v2224_v25 = vrot.slane %v309_v19, 2  ;;  %v2300_v26 = vrot.slane %v309_v19, 4 }
 0x251   :  { %4712 = vmatprep.subr.bf16.mxu0 %v4926_v42  ;;  %4718 = vmatprep.subr.bf16.mxu1 %v4926_v42 }
 0x252   :  { %4305 = vmatprep.mubr.msk.f32.mxu0 %vm4924_vm0, %v4923_v1  ;;  %4316 = vmatprep.mubr.msk.f32.mxu1 %vm4924_vm0, %v4923_v1  ;;  %v5422_v21 = vadd.f32 %v5099_v2, %v294_v18  ;;  %v3812_v18 = vld [vmem:[%s5682_s9 + $0x40] sm:$0xff]  }
 0x254   :  { %4714 = vmatpush3.bf16.msra.mxu0 %v5138_v24  ;;  %4720 = vmatpush3.bf16.msra.mxu1 %v5184_v37  ;;  %v2225_v22 = vrot.slane %v5422_v21, 2  ;;  %v2301_v23 = vrot.slane %v5422_v21, 4 }
 0x255   :  { %4721 = vmatprep.subr.bf16.mxu0 %v4926_v42  ;;  %4727 = vmatprep.subr.bf16.mxu1 %v4926_v42 }
 0x256   :  { %v2302_v29 = vsel %vm536_vm4, %v2300_v26, %v2301_v23  ;;  %v3815_v26 = vld [vmem:[%s5682_s9 + $0x58] sm:$0xff]  }
 0x257   :  { %4306 = vmatmul.mubr.msk.f32.vlgmr.msra.gmra.mrb[34].mxu0 %vm391_vm3, %v5154_v28  ;;  %4317 = vmatmul.mubr.msk.f32.vlgmr.msra.gmra.mrb[24].mxu1 %vm391_vm3, %v992_v0  ;;  %v2226_v28 = vsel %vm387_vm2, %v2224_v25, %v2225_v22  ;;  %v3814_v25 = vld [vmem:[%s5682_s9 + $0x50] sm:$0xff]  }
 0x258   :  { %4723 = vmatpush3.bf16.msra.mxu0 %v5207_v38  ;;  %4729 = vmatpush3.bf16.msra.mxu1 %v5237_v54 }
 0x259   :  { %4724 = vmatprep.subr.bf16.mxu0 %v4926_v42  ;;  %4730 = vmatprep.subr.bf16.mxu1 %v4926_v42 }
 0x25a   :  { %4327 = vmatprep.mubr.msk.f32.mxu0 %vm4924_vm0, %v4923_v1  ;;  %4338 = vmatprep.mubr.msk.f32.mxu1 %vm4924_vm0, %v4923_v1 }
 0x25c   :  { %4726 = vmatpush3.bf16.msra.mxu0 %v5223_v51  ;;  %4732 = vmatpush3.bf16.msra.mxu1 %v5250_v56 }
 0x25d   :  { %4733 = vmatprep.subr.bf16.mxu0 %v4926_v42  ;;  %4739 = vmatprep.subr.bf16.mxu1 %v4926_v42 }
 0x25f   :  { %4328 = vmatmul.mubr.msk.f32.vlgmr.msra.gmra.mrb[36].mxu0 %vm391_vm3, %v5348_v11  ;;  %4339 = vmatmul.mubr.msk.f32.vlgmr.msra.gmra.mrb[26].mxu1 %vm391_vm3, %v5351_v12 }
 0x260   :  { %4735 = vmatpush3.bf16.msra.mxu0 %v5057_v44  ;;  %4741 = vmatpush3.bf16.msra.mxu1 %v5263_v57 }
 0x261   :  { %4736 = vmatprep.subr.bf16.mxu0 %v4926_v42  ;;  %4742 = vmatprep.subr.bf16.mxu1 %v4926_v42 }
 0x262   :  { %4349 = vmatprep.mubr.msk.f32.mxu0 %vm4924_vm0, %v4923_v1  ;;  %4360 = vmatprep.mubr.msk.f32.mxu1 %vm4924_vm0, %v4923_v1 }
 0x264   :  { %4738 = vmatpush3.bf16.msra.mxu0 %v5071_v47  ;;  %4744 = vmatpush3.bf16.msra.mxu1 %v5274_v58 }
 0x265   :  { %4745 = vmatprep.subr.bf16.mxu0 %v4926_v42  ;;  %4751 = vmatprep.subr.bf16.mxu1 %v4926_v42 }
 0x267   :  { %4350 = vmatmul.mubr.msk.f32.vlgmr.msra.gmra.mrb[38].mxu0 %vm391_vm3, %v5342_v7  ;;  %4361 = vmatmul.mubr.msk.f32.vlgmr.msra.gmra.mrb[28].mxu1 %vm391_vm3, %v309_v19 }
 0x268   :  { %4747 = vmatpush3.bf16.msra.mxu0 %v5127_v20  ;;  %4753 = vmatpush3.bf16.msra.mxu1 %v5287_v59 }
 0x269   :  { %4748 = vmatprep.subr.bf16.mxu0 %v4926_v42  ;;  %4754 = vmatprep.subr.bf16.mxu1 %v4926_v42 }
 0x26a   :  { %4371 = vmatprep.mubr.msk.f32.mxu0 %vm4924_vm0, %v4923_v1  ;;  %4382 = vmatprep.mubr.msk.f32.mxu1 %vm4924_vm0, %v4923_v1 }
 0x26c   :  { %4750 = vmatpush3.bf16.msra.mxu0 %v5149_v27  ;;  %4756 = vmatpush3.bf16.msra.mxu1 %v5301_v60 }
 0x26d   :  { %4757 = vmatprep.subr.bf16.mxu0 %v4926_v42  ;;  %4763 = vmatprep.subr.bf16.mxu1 %v4926_v42 }
 0x26f   :  { %4372 = vmatmul.mubr.msk.f32.vlgmr.msra.gmra.mrb[40].mxu0 %vm391_vm3, %v2226_v28  ;;  %4383 = vmatmul.mubr.msk.f32.vlgmr.msra.gmra.mrb[30].mxu1 %vm391_vm3, %v2302_v29 }
 0x270   :  { %4759 = vmatpush3.bf16.msra.mxu0 %v5050_v43  ;;  %4765 = vmatpush3.bf16.msra.mxu1 %v5118_v16  ;;  %v261_v43 = vpop.permute.xlu1 %260 }
 0x271   :  { %4760 = vmatprep.subr.bf16.mxu0 %v4926_v42  ;;  %4766 = vmatprep.subr.bf16.mxu1 %v4926_v42 }
 0x272   :  { %4393 = vmatprep.mubr.msk.f32.mxu0 %vm4924_vm0, %v4923_v1  ;;  %4404 = vmatprep.mubr.msk.f32.mxu1 %vm4924_vm0, %v4923_v1 }
 0x274   :  { %4762 = vmatpush3.bf16.msra.mxu0 %v5064_v45  ;;  %4768 = vmatpush3.bf16.msra.mxu1 %v5138_v24  ;;  %v279_v45 = vmax.f32 %v5191_v40, %v261_v43  ;;  %v3811_v40 = vld [vmem:[%s5682_s9 + $0x38] sm:$0xff]  }
 0x275   :  { %4769 = vmatprep.subr.bf16.mxu0 %v4926_v42  ;;  %4775 = vmatprep.subr.bf16.mxu1 %v4926_v42 }
 0x276   :  { %v295_v16 = vmul.f32 %v5093_v61, %v279_v45 }
 0x277   :  { %4394 = vmatmul.mubr.msk.f32.vlgmr.msra.gmra.mrb[42].mxu0 %vm391_vm3, %v5351_v12  ;;  %4405 = vmatmul.mubr.msk.f32.vlgmr.msra.gmra.mrb[32].mxu1 %vm391_vm3, %v5348_v11 }
 0x278   :  { %4771 = vmatpush3.bf16.msra.mxu0 %v5164_v31  ;;  %4777 = vmatpush3.bf16.msra.mxu1 %v5207_v38 }
 0x279   :  { %4772 = vmatprep.subr.bf16.mxu0 %v4926_v42  ;;  %4778 = vmatprep.subr.bf16.mxu1 %v4926_v42 }
 0x27a   :  { %4415 = vmatprep.mubr.msk.f32.mxu0 %vm4924_vm0, %v4923_v1  ;;  %4426 = vmatprep.mubr.msk.f32.mxu1 %vm4924_vm0, %v4923_v1 }
 0x27c   :  { %4774 = vmatpush3.bf16.msra.mxu0 %v5184_v37  ;;  %4780 = vmatpush3.bf16.msra.mxu1 %v5223_v51 }
 0x27d   :  { %4781 = vmatprep.subr.bf16.mxu0 %v4926_v42  ;;  %4787 = vmatprep.subr.bf16.mxu1 %v4926_v42 }
 0x27f   :  { %4416 = vmatmul.mubr.msk.f32.vlgmr.msra.gmra.mrb[44].mxu0 %vm391_vm3, %v5342_v7  ;;  %4427 = vmatmul.mubr.msk.f32.vlgmr.msra.gmra.mrb[34].mxu1 %vm391_vm3, %v309_v19 }
 0x280   :  { %4783 = vmatpush3.bf16.msra.mxu0 %v5237_v54  ;;  %4789 = vmatpush3.bf16.msra.mxu1 %v5057_v44  ;;  %v311_v44 = vadd.f32 %v5099_v2, %v295_v16  ;;  %v2878_v2 = vrot.slane %v5422_v21, 6 }
 0x281   :  { %4784 = vmatprep.subr.bf16.mxu0 %v4926_v42  ;;  %4790 = vmatprep.subr.bf16.mxu1 %v4926_v42 }
 0x282   :  { %4437 = vmatprep.mubr.msk.f32.mxu0 %vm4924_vm0, %v4923_v1  ;;  %4448 = vmatprep.mubr.msk.f32.mxu1 %vm4924_vm0, %v4923_v1  ;;  %v2803_v61 = vrot.slane %v311_v44, 4 }
 0x284   :  { %4786 = vmatpush3.bf16.msra.mxu0 %v5250_v56  ;;  %4792 = vmatpush3.bf16.msra.mxu1 %v5071_v47  ;;  %v2879_v47 = vrot.slane %v311_v44, 6 }
 0x285   :  { %4793 = vmatprep.subr.bf16.mxu0 %v4926_v42  ;;  %4799 = vmatprep.subr.bf16.mxu1 %v4926_v42 }
 0x286   :  { %v2880_v24 = vsel %vm689_vm5, %v2878_v2, %v2879_v47 }
 0x287   :  { %4438 = vmatmul.mubr.msk.f32.vlgmr.msra.gmra.mrb[46].mxu0 %vm391_vm3, %v2226_v28  ;;  %4449 = vmatmul.mubr.msk.f32.vlgmr.msra.gmra.mrb[36].mxu1 %vm391_vm3, %v2302_v29 }
 0x288   :  { %4795 = vmatpush3.bf16.msra.mxu0 %v5263_v57  ;;  %4801 = vmatpush3.bf16.msra.mxu1 %v5127_v20  ;;  %v2804_v20 = vsel %vm536_vm4, %v2301_v23, %v2803_v61  ;;  %v3813_v23 = vld [vmem:[%s5682_s9 + $0x48] sm:$0xff]   ;;  %v5560_v61 = vld [vmem:[%s5679_s6] ss:$0 sm:$0xff] }
 0x289   :  { %4796 = vmatprep.subr.bf16.mxu0 %v4926_v42  ;;  %4802 = vmatprep.subr.bf16.mxu1 %v4926_v42 }
 0x28a   :  { %4459 = vmatprep.mubr.msk.f32.mxu0 %vm4924_vm0, %v4923_v1  ;;  %4470 = vmatprep.mubr.msk.f32.mxu1 %vm4924_vm0, %v4923_v1 }
 0x28c   :  { %4798 = vmatpush3.bf16.msra.mxu0 %v5274_v58  ;;  %4804 = vmatpush3.bf16.msra.mxu1 %v5149_v27  ;;  %v3808_v27 = vld [vmem:[%s5682_s9 + $0x20] sm:$0xff]  }
 0x28d   :  { %4805 = vmatprep.subr.bf16.mxu0 %v4926_v42  ;;  %4835 = vmatprep.subr.bf16.mxu1 %v4926_v42 }
 0x28f   :  { %4460 = vmatmul.mubr.msk.f32.vlgmr.msra.gmra.mrb[48].mxu0 %vm391_vm3, %v2804_v20  ;;  %4471 = vmatmul.mubr.msk.f32.vlgmr.msra.gmra.mrb[38].mxu1 %vm391_vm3, %v2880_v24 }
 0x290   :  { %4807 = vmatpush3.bf16.msra.mxu0 %v5287_v59  ;;  %4481 = vmatprep.mubr.msk.f32.mxu0 %vm4924_vm0, %v4923_v1 }
 0x291   :  { %4808 = vmatprep.subr.bf16.mxu0 %v4926_v42  ;;  %4538 = vmatprep.mubr.msk.f32.mxu1 %vm4924_vm0, %v4923_v1 }
 0x292   :  { %4837 = vmatpush3.bf16.msra.mxu1 %v3812_v18 }
 0x293   :  { %4838 = vmatprep.subr.bf16.mxu1 %v4926_v42 }
 0x294   :  { %4810 = vmatpush3.bf16.msra.mxu0 %v5301_v60 }
 0x295   :  { %4811 = vmatprep.subr.bf16.mxu0 %v4926_v42 }
 0x296   :  { %4840 = vmatpush3.bf16.msra.mxu1 %v3813_v23  ;;  %v3818_v23 = vld [vmem:[%s5682_s9 + $0x70] sm:$0xff]  }
 0x297   :  { %4482 = vmatmul.mubr.msk.f32.vlgmr.msra.gmra.mrb[50].mxu0 %vm391_vm3, %v311_v44  ;;  %4841 = vmatprep.subr.bf16.mxu1 %v4926_v42 }
 0x298   :  { %4500 = vmatprep.mubr.msk.f32.mxu0 %vm4924_vm0, %v4923_v1  ;;  %4813 = vmatpush3.bf16.msra.mxu0 %v3808_v27 }
 0x299   :  { %4814 = vmatprep.subr.bf16.mxu0 %v4926_v42 }
 0x29a   :  { %4843 = vmatpush3.bf16.msra.mxu1 %v3814_v25  ;;  %v3819_v25 = vld [vmem:[%s5682_s9 + $0x78] sm:$0xff]  }
 0x29b   :  { %4844 = vmatprep.subr.bf16.mxu1 %v4926_v42 }
 0x29c   :  { %4816 = vmatpush3.bf16.msra.mxu0 %v3809_v34 }
 0x29d   :  { %4817 = vmatprep.subr.bf16.mxu0 %v4926_v42 }
 0x29e   :  { %4846 = vmatpush3.bf16.msra.mxu1 %v3815_v26 }
 0x29f   :  { %4859 = vmatprep.subr.bf16.mxu1 %v4926_v42 }
 0x2a0   :  { %4819 = vmatpush3.bf16.msra.mxu0 %v3810_v35 }
 0x2a1   :  { %4820 = vmatprep.subr.bf16.mxu0 %v4926_v42 }
 0x2a4   :  { %4822 = vmatpush3.bf16.msra.mxu0 %v3811_v40 }
 0x2a5   :  { %v460_v30 = vpop.f32.mrb[0].mxu1  ;;  %4823 = vmatprep.subr.bf16.mxu0 %v4926_v42 }
 0x2a6   :  { %v4098_v31 = vpop.f32.mrb[1].mxu1  ;;  %v834_v32 = vpop.f32.mrb[20].mxu0 }
 0x2a7   :  { %v4153_v33 = vpop.f32.mrb[21].mxu0 }
 0x2ad   :  { %v532_v36 = vpop.f32.mrb[2].mxu1 }
 0x2ae   :  { %v533_v37 = vadd.f32 %v532_v36, %v460_v30  ;;  %v4109_v39 = vpop.f32.mrb[3].mxu1 }
 0x2b1   :  { %v985_v41 = vpop.f32.mrb[22].mxu0 }
 0x2b2   :  { %v4175_v46 = vpop.f32.mrb[23].mxu0 }
 0x2b3   :  { %v5567_v46 = vld [vmem:[%s5680_s7] ss:$0 sm:$0xff] }
 0x2b5   :  { %v608_v38 = vpop.f32.mrb[4].mxu1 }
 0x2b6   :  { %v612_v48 = vadd.f32 %v608_v38, %v533_v37  ;;  %v4120_v49 = vpop.f32.mrb[5].mxu1 }
 0x2b7   :  { %v5572_v49 = vld [vmem:[%s5681_s8] ss:$0 sm:$0xff] }
 0x2b9   :  { %v1140_v50 = vpop.f32.mrb[24].mxu0 }
 0x2ba   :  { %v4197_v51 = vpop.f32.mrb[25].mxu0 }
 0x2bd   :  { %v684_v52 = vpop.f32.mrb[6].mxu1 }
 0x2be   :  { %v688_v53 = vadd.f32 %v684_v52, %v612_v48  ;;  %v4131_v54 = vpop.f32.mrb[7].mxu1 }
 0x2c1   :  { %v1280_v55 = vpop.f32.mrb[26].mxu0 }
 0x2c2   :  { %v4219_v56 = vpop.f32.mrb[27].mxu0 }
 0x2c5   :  { %v761_v57 = vpop.f32.mrb[8].mxu1 }
 0x2c6   :  { %v765_v58 = vadd.f32 %v761_v57, %v688_v53  ;;  %v4142_v59 = vpop.f32.mrb[9].mxu1 }
 0x2c8   :  { %v838_v60 = vadd.f32 %v834_v32, %v765_v58  ;;  %v3693_v58 = vld [vmem:[%s5682_s9] sm:$0xff]  }
 0x2c9   :  { %v1422_v62 = vpop.f32.mrb[28].mxu0 }
 0x2ca   :  { %v4241_v63 = vpop.f32.mrb[29].mxu0 }
 0x2cd   :  { %v908_v0 = vpop.f32.mrb[10].mxu1 }
 0x2ce   :  { %v912_v3 = vadd.f32 %v908_v0, %v838_v60  ;;  %v4164_v4 = vpop.f32.mrb[11].mxu1  ;;  %v3805_v60 = vld [vmem:[%s5682_s9 + $0x8] sm:$0xff]  }
 0x2d0   :  { %v989_v5 = vadd.f32 %v985_v41, %v912_v3 }
 0x2d5   :  { %v1061_v7 = vpop.f32.mrb[12].mxu1 }
 0x2d6   :  { %v1065_v8 = vadd.f32 %v1061_v7, %v989_v5  ;;  %v4186_v9 = vpop.f32.mrb[13].mxu1  ;;  %v3806_v5 = vld [vmem:[%s5682_s9 + $0x10] sm:$0xff]  }
 0x2d8   :  { %v1072_v20 = vadd.f32 %v5560_v61, %v1065_v8  ;;  %v3807_v8 = vld [vmem:[%s5682_s9 + $0x18] sm:$0xff]  }
 0x2da   :  { %v1073_v32 = vmax.f32 %v1072_v20, 0.0 }
 0x2dd   :  { %v1210_v10 = vpop.f32.mrb[14].mxu1 }
 0x2de   :  { %v1211_v11 = vadd.f32 %v1210_v10, %v1140_v50  ;;  %v4208_v12 = vpop.f32.mrb[15].mxu1 }
 0x2e0   :  { %v1284_v6 = vadd.f32 %v1280_v55, %v1211_v11 }
 0x2e5   :  { %v1351_v13 = vpop.f32.mrb[16].mxu1 }
 0x2e6   :  { %v1355_v14 = vadd.f32 %v1351_v13, %v1284_v6  ;;  %v4230_v15 = vpop.f32.mrb[17].mxu1  ;;  %v3816_v13 = vld [vmem:[%s5682_s9 + $0x60] sm:$0xff]  }
 0x2e7   :  { %v3817_v15 = vld [vmem:[%s5682_s9 + $0x68] sm:$0xff]  }
 0x2e8   :  { %v1426_v17 = vadd.f32 %v1422_v62, %v1355_v14 }
 0x2ed   :  { %v1493_v19 = vpop.f32.mrb[18].mxu1 }
 0x2ee   :  { %v1497_v21 = vadd.f32 %v1493_v19, %v1426_v17  ;;  %v4252_v22 = vpop.f32.mrb[19].mxu1 }
 0x31a   :  { %v1569_v28 = vpop.f32.mrb[30].mxu0  ;;  %v1645_v29 = vpop.f32.mrb[20].mxu1 }
 0x31b   :  { %v1573_v43 = vadd.f32 %v1569_v28, %v1497_v21  ;;  %v4263_v45 = vpop.f32.mrb[31].mxu0  ;;  %v4274_v16 = vpop.f32.mrb[21].mxu1 }
 0x31d   :  { %v1649_v44 = vadd.f32 %v1645_v29, %v1573_v43 }
 0x322   :  { %v1718_v47 = vpop.f32.mrb[32].mxu0  ;;  %v1791_v2 = vpop.f32.mrb[22].mxu1 }
 0x323   :  { %v1722_v24 = vadd.f32 %v1718_v47, %v1649_v44  ;;  %v4285_v27 = vpop.f32.mrb[33].mxu0  ;;  %v4296_v30 = vpop.f32.mrb[23].mxu1 }
 0x325   :  { %v1723_v31 = vadd.f32 %v5560_v61, %v1722_v24 }
 0x327   :  { %v1724_v33 = vmax.f32 %v1723_v31, 0.0 }
 0x329   :  { %v3029_v34 = vmax.f32 %v1073_v32, %v1724_v33 }
 0x32a   :  { %v1861_v35 = vpop.f32.mrb[34].mxu0  ;;  %v1931_v36 = vpop.f32.mrb[24].mxu1 }
 0x32b   :  { %v3034_v37 = vrot.slane %v3029_v34, 2  ;;  %v1862_v39 = vadd.f32 %v1861_v35, %v1791_v2  ;;  %v4307_v40 = vpop.f32.mrb[35].mxu0  ;;  %v4318_v41 = vpop.f32.mrb[25].mxu1 }
 0x32d   :  { %v3036_v38 = vmax.f32 %v3029_v34, %v3034_v37  ;;  %v1935_v48 = vadd.f32 %v1931_v36, %v1862_v39 }
 0x32f   :  { %v3043_v50 = vmul.f32 %v5567_v46, %v3036_v38 }
 0x331   :  { %v3050_v51 = vadd.f32 %v5572_v49, %v3043_v50 }
 0x332   :  { %v2002_v52 = vpop.f32.mrb[36].mxu0  ;;  %v2073_v53 = vpop.f32.mrb[26].mxu1 }
 0x333   :  { %v2006_v54 = vadd.f32 %v2002_v52, %v1935_v48  ;;  %v4329_v55 = vpop.f32.mrb[37].mxu0  ;;  %v4340_v56 = vpop.f32.mrb[27].mxu1  ;;  %v3122_v57 = vrot.slane %v3050_v51, 4 }
 0x334   :  { %v3823_v56 = vld [vmem:[%s5684_s11 + $0x20] sm:$0xff]  }
 0x335   :  { %v2077_v59 = vadd.f32 %v2073_v53, %v2006_v54  ;;  %4501 = vmatmul.mubr.msk.f32.vlgmr.msra.gmra.mrb[52].mxu0 %vm3123_vm6, %v3122_v57  ;;  %v3824_v57 = vld [vmem:[%s5684_s11 + $0x28] sm:$0xff]  }
 0x336   :  { %4825 = vmatpush3.bf16.msra.mxu0 %v3693_v58  ;;  %4519 = vmatprep.mubr.msk.f32.mxu0 %vm4924_vm0, %v4923_v1  ;;  %v3825_v58 = vld [vmem:[%s5684_s11 + $0x30] sm:$0xff]  }
 0x337   :  { %4826 = vmatprep.subr.bf16.mxu0 %v4926_v42 }
 0x33a   :  { %4828 = vmatpush3.bf16.msra.mxu0 %v3805_v60  ;;  %v2144_v62 = vpop.f32.mrb[38].mxu0  ;;  %v2218_v63 = vpop.f32.mrb[28].mxu1 }
 0x33b   :  { %v2148_v0 = vadd.f32 %v2144_v62, %v2077_v59  ;;  %v4351_v3 = vpop.f32.mrb[39].mxu0  ;;  %v4362_v4 = vpop.f32.mrb[29].mxu1  ;;  %4829 = vmatprep.subr.bf16.mxu0 %v4926_v42  ;;  %v3826_v59 = vld [vmem:[%s5684_s11 + $0x38] sm:$0xff]  }
 0x33d   :  { %v2222_v7 = vadd.f32 %v2218_v63, %v2148_v0 }
 0x33e   :  { %4831 = vmatpush3.bf16.msra.mxu0 %v3806_v5 }
 0x33f   :  { %4832 = vmatprep.subr.bf16.mxu0 %v4926_v42 }
 0x342   :  { %4834 = vmatpush3.bf16.msra.mxu0 %v3807_v8  ;;  %v2295_v9 = vpop.f32.mrb[40].mxu0  ;;  %v2371_v10 = vpop.f32.mrb[30].mxu1 }
 0x343   :  { %v2299_v11 = vadd.f32 %v2295_v9, %v2222_v7  ;;  %v4373_v12 = vpop.f32.mrb[41].mxu0  ;;  %v4384_v6 = vpop.f32.mrb[31].mxu1  ;;  %4847 = vmatprep.subr.bf16.mxu0 %v4926_v42  ;;  %v3618_v9 = vld [vmem:[%s5683_s10] ss:$0 sm:$0xff]  ;;  %s4928_s10 = smov [#allocation2]  }
 0x344   :  { %v3619_v6 = vld [vmem:[%s5685_s12] ss:$0 sm:$0xff]  ;;  %s3553_s0 = sshll.u32 %s4928_s10, 4  ;;  %s3554_s0 = int_to_ptr.vmem [resolvable:$true] %s3553_s0 }
 0x345   :  { %v2375_v14 = vadd.f32 %v2371_v10, %v2299_v11  ;;  %4520 = vmatmul.mubr.msk.f32.vlgmr.msra.gmra.mrb[54].mxu0 %vm3123_vm6, %v3050_v51  ;;  %s4899_s12 = scalar_lea.vmem %s3554_s0, 32  ;;  %p4904_p1 = scmp.lt.s32.totalorder %s3554_s0, %s3554_s0 }
 0x346   :  { %4849 = vmatpush3.bf16.msra.mxu0 %v3816_v13  ;;  %4557 = vmatprep.mubr.msk.f32.mxu0 %vm4924_vm0, %v4923_v1  ;;  %p4900_p0 = scmp.ne.s32.totalorder %s3554_s0, %s4899_s12  ;;  %p4905_p2 = scmp.lt.s32.totalorder %s4899_s12, %s4899_s12 }
 0x347   :  { %4850 = vmatprep.subr.bf16.mxu0 %v4926_v42  ;;  %v2376_v37 = vadd.f32 %v5560_v61, %v2375_v14 }
 0x348   :  { %p4906_p3 = por %p4905_p2, %p4904_p1 }
 0x349   :  { %v2377_v38 = vmax.f32 %v2376_v37, 0.0 }
 0x34a   :  { %v2444_v17 = vpop.f32.mrb[42].mxu0  ;;  %v2514_v18 = vpop.f32.mrb[32].mxu1  ;;  %4852 = vmatpush3.bf16.msra.mxu0 %v3817_v15  ;;  %p4907_p4 = pnand %p4906_p3, %p4900_p0 }
 0x34b   :  { %v2515_v19 = vadd.f32 %v2514_v18, %v2444_v17  ;;  %v4395_v21 = vpop.f32.mrb[43].mxu0  ;;  %v4406_v22 = vpop.f32.mrb[33].mxu1  ;;  %4853 = vmatprep.subr.bf16.mxu0 %v4926_v42 }
 0x34e   :  { %4855 = vmatpush3.bf16.msra.mxu0 %v3818_v23 }
 0x34f   :  { %4856 = vmatprep.subr.bf16.mxu0 %v4926_v42 }
 0x352   :  { %v2584_v26 = vpop.f32.mrb[44].mxu0  ;;  %v2655_v28 = vpop.f32.mrb[34].mxu1  ;;  %4858 = vmatpush3.bf16.msra.mxu0 %v3819_v25 }
 0x353   :  { %v2588_v29 = vadd.f32 %v2584_v26, %v2515_v19  ;;  %v4417_v43 = vpop.f32.mrb[45].mxu0  ;;  %v4428_v45 = vpop.f32.mrb[35].mxu1 }
 0x355   :  { %v2659_v16 = vadd.f32 %v2655_v28, %v2588_v29 }
 0x35a   :  { %v2726_v44 = vpop.f32.mrb[46].mxu0  ;;  %v2797_v47 = vpop.f32.mrb[36].mxu1 }
 0x35b   :  { %v2730_v2 = vadd.f32 %v2726_v44, %v2659_v16  ;;  %v4439_v20 = vpop.f32.mrb[47].mxu0  ;;  %v4450_v24 = vpop.f32.mrb[37].mxu1 }
 0x35d   :  { %v2801_v27 = vadd.f32 %v2797_v47, %v2730_v2 }
 0x362   :  { %v2873_v30 = vpop.f32.mrb[48].mxu0  ;;  %v2949_v31 = vpop.f32.mrb[38].mxu1 }
 0x363   :  { %v2877_v32 = vadd.f32 %v2873_v30, %v2801_v27  ;;  %v4461_v33 = vpop.f32.mrb[49].mxu0  ;;  %v4472_v34 = vpop.f32.mrb[39].mxu1 }
 0x365   :  { %v2953_v35 = vadd.f32 %v2949_v31, %v2877_v32 }
 0x36a   :  { %v3022_v36 = vpop.f32.mrb[50].mxu0 }
 0x36b   :  { %v3026_v39 = vadd.f32 %v3022_v36, %v2953_v35  ;;  %v4483_v40 = vpop.f32.mrb[51].mxu0 }
 0x36d   :  { %v3027_v41 = vadd.f32 %v5560_v61, %v3026_v39  ;;  %v3757_v61 = vld [vmem:[%s5684_s11] sm:$0xff]  }
 0x36f   :  { %v3028_v48 = vmax.f32 %v3027_v41, 0.0 }
 0x371   :  { %v3030_v50 = vmax.f32 %v2377_v38, %v3028_v48 }
 0x373   :  { %v3052_v51 = vrot.slane %v3030_v50, 2 }
 0x375   :  { %v3054_v52 = vmax.f32 %v3030_v50, %v3052_v51 }
 0x377   :  { %v3055_v53 = vmul.f32 %v5567_v46, %v3054_v52  ;;  %v3820_v46 = vld [vmem:[%s5684_s11 + $0x8] sm:$0xff]  }
 0x379   :  { %v3056_v54 = vadd.f32 %v5572_v49, %v3055_v53  ;;  %v3822_v49 = vld [vmem:[%s5684_s11 + $0x18] sm:$0xff]  }
 0x37b   :  { %4539 = vmatmul.mubr.msk.f32.vlgmr.msra.gmra.mrb[40].mxu1 %vm3123_vm6, %v3056_v54  ;;  %v3342_v55 = vrot.slane %v3056_v54, 4 }
 0x37c   :  { %4592 = vmatprep.mubr.msk.f32.mxu1 %vm4924_vm0, %v4923_v1  ;;  %4861 = vmatpush3.bf16.msra.mxu1 %v3757_v61  ;;  %v3821_v1 = vld [vmem:[%s5684_s11 + $0x10] sm:$0xff]  }
 0x37d   :  { %4558 = vmatmul.mubr.msk.f32.vlgmr.msra.gmra.mrb[56].mxu0 %vm3123_vm6, %v3342_v55  ;;  %4862 = vmatprep.subr.bf16.mxu1 %v4926_v42 }
 0x380   :  { %4864 = vmatpush3.bf16.msra.mxu1 %v3820_v46 }
 0x381   :  { %4865 = vmatprep.subr.bf16.mxu1 %v4926_v42 }
 0x384   :  { %4867 = vmatpush3.bf16.msra.mxu1 %v3821_v1 }
 0x385   :  { %4868 = vmatprep.subr.bf16.mxu1 %v4926_v42 }
 0x388   :  { %4870 = vmatpush3.bf16.msra.mxu1 %v3822_v49 }
 0x389   :  { %4871 = vmatprep.subr.bf16.mxu1 %v4926_v42 }
 0x38c   :  { %4873 = vmatpush3.bf16.msra.mxu1 %v3823_v56 }
 0x38d   :  { %4874 = vmatprep.subr.bf16.mxu1 %v4926_v42 }
 0x390   :  { %4876 = vmatpush3.bf16.msra.mxu1 %v3824_v57 }
 0x391   :  { %4877 = vmatprep.subr.bf16.mxu1 %v4926_v42 }
 0x394   :  { %4879 = vmatpush3.bf16.msra.mxu1 %v3825_v58 }
 0x395   :  { %4880 = vmatprep.subr.bf16.mxu1 %v4926_v42 }
 0x398   :  { %4882 = vmatpush3.bf16.msra.mxu1 %v3826_v59 }
 0x408   :  { %v3192_v60 = vpop.f32.mrb[52].mxu0 }
 0x409   :  { %v4502_v62 = vpop.f32.mrb[53].mxu0 }
 0x418   :  { %v3264_v63 = vpop.f32.mrb[54].mxu0 }
 0x419   :  { %v3265_v0 = vadd.f32 %v3264_v63, %v3192_v60  ;;  %v4521_v3 = vpop.f32.mrb[55].mxu0 }
 0x44e   :  { %v3337_v4 = vpop.f32.mrb[40].mxu1 }
 0x44f   :  { %v3341_v5 = vadd.f32 %v3337_v4, %v3265_v0  ;;  %v4540_v7 = vpop.f32.mrb[41].mxu1 }
 0x450   :  { %v3411_v8 = vpop.f32.mrb[56].mxu0 }
 0x451   :  { %v3415_v10 = vadd.f32 %v3411_v8, %v3341_v5  ;;  %v4559_v42 = vpop.f32.mrb[57].mxu0 }
 0x453   :  { %v3423_v11 = vadd.f32 %v3618_v9, %v3415_v10 }
 0x455   :  { %v3424_v12 = vmax.f32 %v3423_v11, 0.0 }
 0x457   :  { %4593 = vmatmul.mubr.f32.vlgmr.msra.gmra.mrb[42].mxu1 %v3424_v12 }
 0x52a   :  { %v3530_v13 = vpop.f32.mrb[42].mxu1 }
 0x52b   :  { %v3531_v14 = vadd.f32 %v3619_v6, %v3530_v13  ;;  %v4594_v15 = vpop.f32.mrb[43].mxu1 }
 0x52d   :  { %v3535_v17 = vsel %vm3534_vm7, %v3531_v14, -inf }
 0x52e   :  { %3536 = vmax.xlane.f32.xlu0 %v3535_v17 }
 0x5bb   :  { %v3537_v18 = vpop.xlane.xlu0 %3536 }
 0x5bc   :  { %v3538_v19 = vsub.f32 %v3531_v14, %v3537_v18 }
 0x5be   :  { %v3539_v21 = vmul.f32 1.442695, %v3538_v19 }
 0x5c0   :  { %4895 = vpow2.f32 %v3539_v21 }
 0x5ca   :  { %v4896_v22 = vpop.eup %4895 }
 0x5cb   :  { %v3541_v23 = vsel %vm3534_vm7, %v4896_v22, 0.0 }
 0x5cc   :  { %3542 = vadd.xlane.f32.xlu1 %v3541_v23 }
 0x659   :  { %v3543_v25 = vpop.xlane.xlu1 %3542 }
 0x65a   :  { %4897 = vrcp.f32 %v3543_v25 }
 0x664   :  { %v4898_v26 = vpop.eup %4897 }
 0x665   :  { %v3545_v28 = vmul.f32 %v4898_v26, %v4896_v22 }
 0x667   :  { %3546 = vst.msk [vmem:[#allocation2] sm:$0x3] %vm3534_vm7, %v3545_v28 }
 0x668   :  { %4910 = shalt.err (!%p4907_p4)
}
 0x669   :  { %s4911_s23 = scalar_lea.hbm %s5686_s13, 32 }
 0x66a   :  { %p4912_p5 = scmp.ne.s32.totalorder %s5686_s13, %s4911_s23  ;;  %p4915_p6 = scmp.lt.u32.totalorder %s4911_s23, %s5686_s13 }
 0x66c   :  { %p4917_p7 = pnand %p4915_p6, %p4912_p5 }
 0x66e   :  { %4920 = shalt.err (!%p4917_p7)
}
 0x66f   :  { %3556 = dma.vmem_to_hbm [thread:$0]  %s3554_s0, 32, %s5686_s13, [#allocation3]  }
 0x670   :  { %4921 = dma.done.wait [#allocation3], 32  }
 0x671   :  { %4922 = vsyncadd [#allocation3], 4294967264 }
 0x672   :  { %3560 = vsyncpa [#allocation3], 1 }

</bundles_post_ra>
